<compile_context>
chip_gen: v7x
topology: tpu7x:2x2x1
jax: 0.10.0
libtpu: 0.0.40
codegen_flags: <defaults>
</compile_context>

<pallas_src>
import numpy as np
import jax
import jax.numpy as jnp
from jax.experimental import pallas as pl
from jax.experimental.pallas import tpu as pltpu

D_IN = 2      # (x0 = space, x1 = time)
HIDDEN = 32
D_OUT = 1
N_LOSS = 4    # 2 pdes + 1 bc + 1 ic
EPS = 1e-6
N_VCOLS = 8   # small-vector pack: one field per lane column (padded to 8)


def _pinn_loss_kernel(xT_ref, w2T_ref, vp_ref, loss_ref):
    # lanes = collocation points (lane-dense batch layout)
    x0 = xT_ref[0:1, :]                    # (1, TN)
    x1 = xT_ref[1:2, :]                    # (1, TN)
    w2T = w2T_ref[...]                     # (H, H), lane offset 0
    vp = vp_ref[...]                       # (H, 8)

    w1c0 = vp[:, 0:1]                      # (H, 1) weights multiplying x0
    w1c1 = vp[:, 1:2]                      # (H, 1) weights multiplying x1
    b1 = vp[:, 2:3]                        # (H, 1)
    b2 = vp[:, 3:4]                        # (H, 1)
    w3c = vp[:, 4:5]                       # (H, 1) output weights
    b3 = vp[0:1, 5:6]                      # (1, 1) output bias

    # ---- layer 1 on the VPU (K=2 contraction not worth an MXU pass) ----
    z1 = w1c0 * x0 + w1c1 * x1 + b1        # (H,1)*(1,TN) broadcast -> (H, TN)
    h1 = jnp.tanh(z1)
    g1 = 1.0 - h1 * h1                     # tanh'
    # forward-mode tangents w.r.t. x0 / x1 (dz1/dx_d is a constant column)
    dh1_0 = g1 * w1c0
    dh1_1 = g1 * w1c1

    # ---- layer 2: 3 dots against the same stationary (H, H) weight ----
    # (no concat materialization; MXU has plenty of slack for 3 pushes)
    z2 = jnp.dot(w2T, h1, preferred_element_type=jnp.float32) + b2
    dz2_0 = jnp.dot(w2T, dh1_0, preferred_element_type=jnp.float32)
    dz2_1 = jnp.dot(w2T, dh1_1, preferred_element_type=jnp.float32)
    h2 = jnp.tanh(z2)
    g2 = 1.0 - h2 * h2
    dh2_0 = g2 * dz2_0
    dh2_1 = g2 * dz2_1

    # ---- layer 3 (M=1 output row): VPU multiply + sublane-sum over H=32 ----
    u = jnp.sum(w3c * h2, axis=0, keepdims=True) + b3        # (1, TN)
    du_dx = jnp.sum(w3c * dh2_0, axis=0, keepdims=True)      # (1, TN)
    du_dt = jnp.sum(w3c * dh2_1, axis=0, keepdims=True)      # (1, TN)

    # PDE residuals (each pde(x,u) is (N, D_OUT=1); sum(axis=1) is identity)
    r1 = du_dt + u * du_dx                 # Burgers-like transport residual
    r2 = du_dx                             # second synthetic residual

    # BC: Dirichlet u = 0 on |x0| == 1  (masked -> zero off-boundary)
    bc_mask = (jnp.abs(jnp.abs(x0) - 1.0) <= EPS).astype(jnp.float32)
    bc = bc_mask * u

    # IC: u = sin(pi * x0) at x1 == 0   (masked -> zero off the initial slice)
    ic_mask = (jnp.abs(x1) <= EPS).astype(jnp.float32)
    ic = ic_mask * (u - jnp.sin(jnp.pi * x0))

    # single lane-dense store of the whole (4, TN) loss tile
    loss_ref[...] = jnp.concatenate([r1, r2, bc, ic], axis=0)


def network_with_pde_forward(x, params, *, tile_n=1024, transposed_output=False):
    """x: (N, 2) f32 collocation points -> per-point loss matrix.

    Returns (N, 4) (the torch module's layout). With transposed_output=True
    returns the kernel-native lane-dense (4, N) and skips the extra HBM
    transpose pass (use when the consumer can accept that layout).

    tile_n guidance: sweep 1024/2048/4096. v5e: keep <= ~4096 with the default
    scoped VMEM; v6e: can go higher; v7x: keep n//tile_n >= 2 so both
    TensorCores get grid steps.
    """
    w1, b1, w2, b2, w3, b3 = params
    n = x.shape[0]
    tile_n = min(tile_n, n)
    assert n % 128 == 0, "pad N to a multiple of 128"
    assert tile_n % 128 == 0 and n % tile_n == 0
    grid = (n // tile_n,)

    # layout plumbing (not compute hoisting): lanes = batch, aligned weights.
    xT = x.T                                                   # (2, N)
    w2T = w2.T                                                 # (H, H)
    vpack = jnp.concatenate(
        [w1.T[:, 0:1],                                         # col 0: dW1/dx0
         w1.T[:, 1:2],                                         # col 1: dW1/dx1
         b1.T,                                                 # col 2
         b2.T,                                                 # col 3
         w3,                                                   # col 4
         jnp.full((HIDDEN, 1), b3[0, 0], jnp.float32),         # col 5: b3
         jnp.zeros((HIDDEN, 2), jnp.float32)], axis=1)         # cols 6-7: pad

    full = lambda i: (0, 0)
    lossT = pl.pallas_call(
        _pinn_loss_kernel,
        out_shape=jax.ShapeDtypeStruct((N_LOSS, n), jnp.float32),
        grid_spec=pltpu.PrefetchScalarGridSpec(
            num_scalar_prefetch=0,
            grid=grid,
            in_specs=[
                pl.BlockSpec((D_IN, tile_n), lambda i: (0, i)),
                pl.BlockSpec((HIDDEN, HIDDEN), full),
                pl.BlockSpec((HIDDEN, N_VCOLS), full),
            ],
            out_specs=pl.BlockSpec((N_LOSS, tile_n), lambda i: (0, i)),
        ),
        compiler_params=pltpu.CompilerParams(
            dimension_semantics=("parallel",)),
    )(xT, w2T, vpack)

    if transposed_output:
        return lossT                                           # (4, N)
    return lossT.T                                             # (N, 4)


# ---------------- pure-JAX reference (for correctness check) ----------------
def _reference(x, params):
    w1, b1, w2, b2, w3, b3 = params
    hp = jax.lax.Precision.HIGHEST   # accurate f32 reference matmuls

    def pinn(xx):
        h1 = jnp.tanh(jnp.dot(xx, w1, precision=hp) + b1)
        h2 = jnp.tanh(jnp.dot(h1, w2, precision=hp) + b2)
        return jnp.dot(h2, w3, precision=hp) + b3

    u = pinn(x)
    # per-sample Jacobian du/dx via vmapped jacrev
    jac = jax.vmap(jax.jacrev(lambda xx: pinn(xx[None, :])[0, 0]))(x)  # (N, 2)
    du_dx = jac[:, 0:1]
    du_dt = jac[:, 1:2]
    r1 = du_dt + u * du_dx
    r2 = du_dx
    x0 = x[:, 0:1]
    x1 = x[:, 1:2]
    bc_mask = (jnp.abs(jnp.abs(x0) - 1.0) <= EPS).astype(jnp.float32)
    ic_mask = (jnp.abs(x1) <= EPS).astype(jnp.float32)
    bc = bc_mask * u
    ic = ic_mask * (u - jnp.sin(jnp.pi * x0))
    return jnp.concatenate([r1, r2, bc, ic], axis=1)


if __name__ == "__main__":
    key = jax.random.PRNGKey(0)
    k_x, k1, k2, k3 = jax.random.split(key, 4)

    # deterministic MLP parameters (nonzero biases to exercise the packing)
    w1 = (jax.random.normal(k1, (D_IN, HIDDEN), jnp.float32)
          / np.sqrt(D_IN)).astype(jnp.float32)
    b1 = 0.1 * jax.random.normal(jax.random.fold_in(k1, 1), (1, HIDDEN),
                                 jnp.float32)
    w2 = (jax.random.normal(k2, (HIDDEN, HIDDEN), jnp.float32)
          / np.sqrt(HIDDEN)).astype(jnp.float32)
    b2 = 0.1 * jax.random.normal(jax.random.fold_in(k2, 1), (1, HIDDEN),
                                 jnp.float32)
    w3 = (jax.random.normal(k3, (HIDDEN, D_OUT), jnp.float32)
          / np.sqrt(HIDDEN)).astype(jnp.float32)
    b3 = 0.1 * jax.random.normal(jax.random.fold_in(k3, 1), (1, D_OUT),
                                 jnp.float32)
    params = (w1, b1, w2, b2, w3, b3)

    # collocation points in [-1,1] x [0,1]; force some boundary / initial pts
    N = 2048
    x0 = jax.random.uniform(k_x, (N, 1), jnp.float32, -1.0, 1.0)
    x1 = jax.random.uniform(jax.random.fold_in(k_x, 1), (N, 1),
                            jnp.float32, 0.0, 1.0)
    x = jnp.concatenate([x0, x1], axis=1)
    x = x.at[0:8, 0].set(1.0)    # right spatial boundary
    x = x.at[8:16, 0].set(-1.0)  # left spatial boundary
    x = x.at[16:32, 1].set(0.0)  # initial-time slice

    out = network_with_pde_forward(x, params, tile_n=1024)  # grid=(2,)
    out = jax.block_until_ready(out)

    ref = _reference(x, params)
    # All math is f32 (no bf16 casts); agreement with the HIGHEST-precision
    # reference is ~1e-6 on the exact-f32 MXU path. Tolerance keeps headroom
    # for MXU f32 multi-pass rounding differences across TPU generations.
    np.testing.assert_allclose(np.asarray(out), np.asarray(ref),
                               rtol=1e-2, atol=1e-3)
    print("KERNEL_OK")
</pallas_src>

<mosaic_0001>
module attributes {stable_mosaic.version = 11 : i64} {
  func.func @_pinn_loss_kernel(%arg0: i32, %arg1: memref<2x1024xf32, #tpu.memory_space<vmem>>, %arg2: memref<32x32xf32, #tpu.memory_space<vmem>>, %arg3: memref<32x8xf32, #tpu.memory_space<vmem>>, %arg4: memref<4x1024xf32, #tpu.memory_space<vmem>>) attributes {dimension_semantics = [#tpu.dimension_semantics<parallel>], iteration_bounds = array<i64: 2>, scalar_prefetch = 0 : i64, scratch_operands = 0 : i64, tpu.core_type = #tpu.core_type<tc>, window_params = [{transform_indices = @transform_0, window_bounds = array<i64: 2, 1024>}, {pipeline_mode = #tpu.pipeline_mode<synchronous>, transform_indices = @transform_1, window_bounds = array<i64: 32, 32>}, {pipeline_mode = #tpu.pipeline_mode<synchronous>, transform_indices = @transform_2, window_bounds = array<i64: 32, 8>}, {transform_indices = @transform_3, window_bounds = array<i64: 4, 1024>}]} {
    %c0 = arith.constant 0 : index
    %c0_0 = arith.constant 0 : index
    %0 = vector.load %arg1[%c0, %c0_0] : memref<2x1024xf32, #tpu.memory_space<vmem>>, vector<1x1024xf32>
    %c1 = arith.constant 1 : index
    %c0_1 = arith.constant 0 : index
    %1 = vector.load %arg1[%c1, %c0_1] : memref<2x1024xf32, #tpu.memory_space<vmem>>, vector<1x1024xf32>
    %c0_2 = arith.constant 0 : index
    %c0_3 = arith.constant 0 : index
    %2 = vector.load %arg2[%c0_2, %c0_3] : memref<32x32xf32, #tpu.memory_space<vmem>>, vector<32x32xf32>
    %c0_4 = arith.constant 0 : index
    %c0_5 = arith.constant 0 : index
    %3 = vector.load %arg3[%c0_4, %c0_5] : memref<32x8xf32, #tpu.memory_space<vmem>>, vector<32x8xf32>
    %4 = vector.extract_strided_slice %3 {offsets = [0, 0], sizes = [32, 1], strides = [1, 1]} : vector<32x8xf32> to vector<32x1xf32>
    %5 = vector.extract_strided_slice %3 {offsets = [0, 1], sizes = [32, 1], strides = [1, 1]} : vector<32x8xf32> to vector<32x1xf32>
    %6 = vector.extract_strided_slice %3 {offsets = [0, 2], sizes = [32, 1], strides = [1, 1]} : vector<32x8xf32> to vector<32x1xf32>
    %7 = vector.extract_strided_slice %3 {offsets = [0, 3], sizes = [32, 1], strides = [1, 1]} : vector<32x8xf32> to vector<32x1xf32>
    %8 = vector.extract_strided_slice %3 {offsets = [0, 4], sizes = [32, 1], strides = [1, 1]} : vector<32x8xf32> to vector<32x1xf32>
    %9 = vector.extract_strided_slice %3 {offsets = [0, 5], sizes = [1, 1], strides = [1, 1]} : vector<32x8xf32> to vector<1x1xf32>
    %10 = vector.broadcast %4 : vector<32x1xf32> to vector<32x1024xf32>
    %11 = vector.broadcast %0 : vector<1x1024xf32> to vector<32x1024xf32>
    %12 = arith.mulf %10, %11 : vector<32x1024xf32>
    %13 = vector.broadcast %5 : vector<32x1xf32> to vector<32x1024xf32>
    %14 = vector.broadcast %1 : vector<1x1024xf32> to vector<32x1024xf32>
    %15 = arith.mulf %13, %14 : vector<32x1024xf32>
    %16 = arith.addf %12, %15 : vector<32x1024xf32>
    %17 = vector.broadcast %6 : vector<32x1xf32> to vector<32x1024xf32>
    %18 = arith.addf %16, %17 : vector<32x1024xf32>
    %19 = math.tanh %18 : vector<32x1024xf32>
    %20 = arith.mulf %19, %19 : vector<32x1024xf32>
    %cst = arith.constant 1.000000e+00 : f32
    %21 = vector.broadcast %cst : f32 to vector<32x1024xf32>
    %22 = arith.subf %21, %20 : vector<32x1024xf32>
    %23 = vector.broadcast %4 : vector<32x1xf32> to vector<32x1024xf32>
    %24 = arith.mulf %22, %23 : vector<32x1024xf32>
    %25 = vector.broadcast %5 : vector<32x1xf32> to vector<32x1024xf32>
    %26 = arith.mulf %22, %25 : vector<32x1024xf32>
    %cst_6 = arith.constant dense<0.000000e+00> : vector<32x1024xf32>
    %27 = tpu.matmul %2, %19, %cst_6 {dimension_numbers = #tpu.dot_dimension_numbers<[1], [0], [0], [1], [0, 0, 1, 1], [], []>} : vector<32x32xf32>, vector<32x1024xf32>, vector<32x1024xf32> -> vector<32x1024xf32>
    %28 = vector.broadcast %7 : vector<32x1xf32> to vector<32x1024xf32>
    %29 = arith.addf %27, %28 : vector<32x1024xf32>
    %cst_7 = arith.constant dense<0.000000e+00> : vector<32x1024xf32>
    %30 = tpu.matmul %2, %24, %cst_7 {dimension_numbers = #tpu.dot_dimension_numbers<[1], [0], [0], [1], [0, 0, 1, 1], [], []>} : vector<32x32xf32>, vector<32x1024xf32>, vector<32x1024xf32> -> vector<32x1024xf32>
    %cst_8 = arith.constant dense<0.000000e+00> : vector<32x1024xf32>
    %31 = tpu.matmul %2, %26, %cst_8 {dimension_numbers = #tpu.dot_dimension_numbers<[1], [0], [0], [1], [0, 0, 1, 1], [], []>} : vector<32x32xf32>, vector<32x1024xf32>, vector<32x1024xf32> -> vector<32x1024xf32>
    %32 = math.tanh %29 : vector<32x1024xf32>
    %33 = arith.mulf %32, %32 : vector<32x1024xf32>
    %cst_9 = arith.constant 1.000000e+00 : f32
    %34 = vector.broadcast %cst_9 : f32 to vector<32x1024xf32>
    %35 = arith.subf %34, %33 : vector<32x1024xf32>
    %36 = arith.mulf %35, %30 : vector<32x1024xf32>
    %37 = arith.mulf %35, %31 : vector<32x1024xf32>
    %38 = vector.broadcast %8 : vector<32x1xf32> to vector<32x1024xf32>
    %39 = arith.mulf %38, %32 : vector<32x1024xf32>
    %cst_10 = arith.constant dense<0.000000e+00> : vector<1024xf32>
    %40 = vector.multi_reduction <add>, %39, %cst_10 [0] : vector<32x1024xf32> to vector<1024xf32>
    %41 = vector.shape_cast %40 : vector<1024xf32> to vector<1x1024xf32>
    %42 = vector.broadcast %9 : vector<1x1xf32> to vector<1x1024xf32>
    %43 = arith.addf %41, %42 : vector<1x1024xf32>
    %44 = vector.broadcast %8 : vector<32x1xf32> to vector<32x1024xf32>
    %45 = arith.mulf %44, %36 : vector<32x1024xf32>
    %cst_11 = arith.constant dense<0.000000e+00> : vector<1024xf32>
    %46 = vector.multi_reduction <add>, %45, %cst_11 [0] : vector<32x1024xf32> to vector<1024xf32>
    %47 = vector.shape_cast %46 : vector<1024xf32> to vector<1x1024xf32>
    %48 = vector.broadcast %8 : vector<32x1xf32> to vector<32x1024xf32>
    %49 = arith.mulf %48, %37 : vector<32x1024xf32>
    %cst_12 = arith.constant dense<0.000000e+00> : vector<1024xf32>
    %50 = vector.multi_reduction <add>, %49, %cst_12 [0] : vector<32x1024xf32> to vector<1024xf32>
    %51 = vector.shape_cast %50 : vector<1024xf32> to vector<1x1024xf32>
    %52 = arith.mulf %43, %47 : vector<1x1024xf32>
    %53 = arith.addf %51, %52 : vector<1x1024xf32>
    %54 = math.absf %0 : vector<1x1024xf32>
    %cst_13 = arith.constant 1.000000e+00 : f32
    %55 = vector.broadcast %cst_13 : f32 to vector<1x1024xf32>
    %56 = arith.subf %54, %55 : vector<1x1024xf32>
    %57 = math.absf %56 : vector<1x1024xf32>
    %cst_14 = arith.constant 9.99999997E-7 : f32
    %58 = vector.broadcast %cst_14 : f32 to vector<1x1024xf32>
    %59 = arith.cmpf ole, %57, %58 : vector<1x1024xf32>
    %60 = arith.extui %59 : vector<1x1024xi1> to vector<1x1024xi32>
    %61 = arith.sitofp %60 : vector<1x1024xi32> to vector<1x1024xf32>
    %62 = arith.mulf %61, %43 : vector<1x1024xf32>
    %63 = math.absf %1 : vector<1x1024xf32>
    %cst_15 = arith.constant 9.99999997E-7 : f32
    %64 = vector.broadcast %cst_15 : f32 to vector<1x1024xf32>
    %65 = arith.cmpf ole, %63, %64 : vector<1x1024xf32>
    %66 = arith.extui %65 : vector<1x1024xi1> to vector<1x1024xi32>
    %67 = arith.sitofp %66 : vector<1x1024xi32> to vector<1x1024xf32>
    %cst_16 = arith.constant 3.14159274 : f32
    %68 = vector.broadcast %cst_16 : f32 to vector<1x1024xf32>
    %69 = arith.mulf %68, %0 : vector<1x1024xf32>
    %70 = math.sin %69 : vector<1x1024xf32>
    %71 = arith.subf %43, %70 : vector<1x1024xf32>
    %72 = arith.mulf %67, %71 : vector<1x1024xf32>
    %73 = tpu.concatenate %53, %47, %62, %72 in 0 : vector<1x1024xf32>, vector<1x1024xf32>, vector<1x1024xf32>, vector<1x1024xf32> -> vector<4x1024xf32>
    %c0_17 = arith.constant 0 : index
    %c0_18 = arith.constant 0 : index
    %74 = vector.load %arg4[%c0_17, %c0_18] : memref<4x1024xf32, #tpu.memory_space<vmem>>, vector<4x1024xf32>
    tpu.vector_store %arg4[%c0_17, %c0_18], %73 {strides = array<i32>} : memref<4x1024xf32, #tpu.memory_space<vmem>>, vector<4x1024xf32>,
    return
  }
  func.func @transform_0(%arg0: i32) -> (i32, i32) {
    %c0_i32 = arith.constant 0 : i32
    %c0_i32_0 = arith.constant 0 : i32
    return %c0_i32, %arg0 : i32, i32
  }
  func.func @transform_1(%arg0: i32) -> (i32, i32) {
    %c0_i32 = arith.constant 0 : i32
    %c0_i32_0 = arith.constant 0 : i32
    %c0_i32_1 = arith.constant 0 : i32
    return %c0_i32, %c0_i32_0 : i32, i32
  }
  func.func @transform_2(%arg0: i32) -> (i32, i32) {
    %c0_i32 = arith.constant 0 : i32
    %c0_i32_0 = arith.constant 0 : i32
    %c0_i32_1 = arith.constant 0 : i32
    return %c0_i32, %c0_i32_0 : i32, i32
  }
  func.func @transform_3(%arg0: i32) -> (i32, i32) {
    %c0_i32 = arith.constant 0 : i32
    %c0_i32_0 = arith.constant 0 : i32
    return %c0_i32, %arg0 : i32, i32
  }
}

</mosaic_0001>

<bundles_post_ra>
// kernel: tpu_custom_call.1
= control target key start
LH: loop header
LB: loop body
LE: loop exit
PB: predicated region body
PF: predicated region fallthrough
CT: control target
= control target key end

     0   :  { %8 = vsyncpa [#allocation3], 0  ;;  %s5272_s0 = inlined_call_operand.vmem [shape: f32[2,2048], index: 0, kind: input, shape index: {}]   ;;  %s5273_s1 = inlined_call_operand.hbm [shape: f32[32,32], index: 1, kind: input, shape index: {}]   ;;  %s5274_s2 = inlined_call_operand.vmem [shape: f32[32,8], index: 2, kind: input, shape index: {}]   ;;  %s5275_s3 = inlined_call_operand.hbm [shape: f32[4,2048], index: 3, kind: output, shape index: {}]  }
   0x1   :  { %9 = vsyncpa [#allocation4], 0 }
   0x2   :  { %11 = vsyncpa [#allocation4 + $0x1], 0  ;;  %s3250_s12 = smov 0   ;;  %s3252_s13 = smov 0  }
   0x3   :  { %s3254_s14 = smov 0   ;;  %s3256_s15 = smov 0  }
   0x4 LB: > { %s3271_s16 = sadd.s32 4294967295, %s3210_s15   ;;  %s2730_s17 = sadd.s32 4294967294, %s3210_s15   ;;  %s3210_s15 = sphi %s3256_s15, %s5673_s15   ;;  %s3206_s14 = sphi %s3254_s14, %s5672_s14   ;;  %s3202_s13 = sphi %s3252_s13, %s5671_s13   ;;  %s3198_s12 = sphi %s3250_s12, %s5670_s12  }
   0x5   : > { %s3275_s18 = sadd.s32 1, %s3210_s15   ;;  %s92_s19 = sadd.s32 1, %s3206_s14 }
   0x6   : > { %s89_s20 = ssub.s32 %s3210_s15, %s3275_s18  ;;  %p102_p0 = scmp.ne.s32.totalorder %s3206_s14, %s3202_s13 }
   0x7   : > { %p90_p1 = scmp.eq.s32.totalorder %s89_s20, 0  ;;  %p103_p2 = scmp.eq.s32.totalorder %s3271_s16, 1 }
   0x8   : > { %p108_p3 = scmp.ne.s32.totalorder %s3202_s13, %s3198_s12  ;;  %p109_p4 = scmp.eq.s32.totalorder %s2730_s17, 1 }
   0x9   : > { %s3286_s21 = scalar_select %p90_p1, %s3206_s14, %s92_s19  }
   0xa   : > { %p3288_p5 = por %p103_p2, %p102_p0  ;;  %p3292_p6 = por %p109_p4, %p108_p3 }
   0xb   : > { %p2731_p7 = scmp.ge.s32.totalorder %s3210_s15, 1  ;;  %p116_p8 = scmp.lt.s32.totalorder %s3210_s15, 3 }
   0xc   : > { %s5404_s22 = scalar_select %p3288_p5, 1, 0 }
   0xd   : > { %s5405_s23 = scalar_select %p3292_p6, 1, 0 }
   0xe   : > { %p5276_p9 = scmp.eq.s32.totalorder %s3271_s16, 0  ;;  %p3299_p10 = pnand %p2731_p7, %p116_p8 }
   0xf   : > { %s3212_s25 = smov [#allocation2]   ;;  %s3116_s30 = scalar_lea.hbm %s5273_s1, 512 }
  0x10   : > { %s5406_s24 = scalar_select %p3299_p10, 1, 0 }
  0x11   : > { %s128_s26 = sshll.u32 %s3212_s25, 4  ;;  %p2907_p11 = pneg %p3299_p10  ;;  %s129_s26 = int_to_ptr.vmem [resolvable:$true] %s128_s26 }
  0x12   : > { %p3117_p13 = scmp.ne.s32.totalorder %s5273_s1, %s3116_s30  ;;  %p3123_p3 = scmp.lt.u32.totalorder %s3116_s30, %s5273_s1 }
  0x13   : > { %p3307_p12 = pnand %p5276_p9, %p2907_p11 }
  0x15   : > { %p3118_p0 = pneg %p3307_p12 }
  0x17   : > { %p3119_p1 = pnand %p3118_p0, %p3117_p13 }
  0x19   : > { %p3120_p2 = pneg %p3119_p1 }
  0x1b   : > { %p3125_p4 = pnand %p3123_p3, %p3120_p2 }
  0x1d   : > { %3128 = shalt.err (!%p3125_p4)
}
  0x1e   : > { %s3129_s8 = scalar_lea.vmem %s129_s26, 512  ;;  %p3137_p9 = scmp.lt.s32.totalorder %s129_s26, %s129_s26 }
  0x1f   : > { %p3130_p7 = scmp.ne.s32.totalorder %s129_s26, %s3129_s8  ;;  %p3138_p6 = scmp.lt.s32.totalorder %s3129_s8, %s3129_s8 }
  0x21   : > { %p3132_p8 = pnand %p3130_p7, %p3118_p0  ;;  %p3139_p5 = por %p3138_p6, %p3137_p9 }
  0x23   : > { %p3133_p11 = pneg %p3132_p8 }
  0x25   : > { %p3140_p10 = pnand %p3139_p5, %p3133_p11 }
  0x27   : > { %3143 = shalt.err (!%p3140_p10)
}
  0x28   : > { %s3213_s9 = smov 128   ;;  %s3214_s10 = smov 8  }
  0x29   : > { %2910 = dma.hbm_to_vmem [thread:$0]  (!%p3307_p12), %s5273_s1, 512, %s129_s26, [#allocation3], %s3213_s9, %s3213_s9, %s3214_s10  }
  0x2a   : > { %p5408_p13 = scmp.ne.s32.totalorder %s5406_s24, 0 }
  0x2c   : > { %156 = sbr.rel (%p5408_p13) target bundleno = 641 (0x281), region = 32 }
  0x33   : > { %p5409_p1 = scmp.eq.s32.totalorder %s3271_s16, 0 }
  0x35   : > { %3189 = dma.done.wait (%p5409_p1), [#allocation3], 512   ;;  %p5410_p0 = pmov %p5409_p1 }
  0x36   : > { %v3215_v0 = vmov 1   ;;  %v3216_v1 = vmov 0   ;;  %v3336_v2 = vld [vmem:[%s5274_s2] sm:$0xff]  ;;  %v3343_v3 = vld [vmem:[%s5274_s2 + $0x8] sm:$0xff]  ;;  %v3350_v4 = vld [vmem:[%s5274_s2 + $0x10] sm:$0xff]  ;;  %v3217_v6 = vmov 2   ;;  %v219_v8 = vlaneseq }
  0x37   : > { %3191 = vsyncadd (%p5410_p0), [#allocation3], 4294966784  ;;  %2968 = vset.pattern.permute.xlu1 %v3215_v0  ;;  %2967 = vset.pattern.permute.xlu0 %v3216_v1  ;;  %5411 = vst [vmem:[#allocation8_spill] sm:$0xff] %v3343_v3  ;;  %v3355_v5 = vld [vmem:[%s5274_s2 + $0x18] sm:$0xff]  ;;  %v5279_v7 = vmov 0.0   ;;  %s2737_s30 = sshll.u32 %s3271_s16, 3 }
  0x38   : > { %292 = vperm.xlu1 %2968, %v3336_v2   ;;  %200 = vperm.xlu0 %2967, %v3336_v2   ;;  %5412 = vst [vmem:[#allocation9_spill] sm:$0xff] %v3350_v4  ;;  %5413 = vst [vmem:[#allocation10_spill] sm:$0xff] %v3355_v5  ;;  %p181_p5 = scmp.lt.s32.totalorder %s2737_s30, 15  ;;  %v3368_v9 = vshrl.u32 %v219_v8, 7  ;;  %vm636_vm0 = vcmask 261120   ;;  %s177_s20 = sand.u32 1, %s3202_s13  }
  0x39   : > { %713 = vmatprep.mubr.f32.mxu0 %v5279_v7  ;;  %802 = vmatprep.mubr.f32.mxu1 %v5279_v7  ;;  %s2736_s24 = sshll.u32 %s177_s20, 5  ;;  %s2800_s26 = sshll.u32 %s3271_s16, 9 }
  0x3a   : > { %s5675_s30 = smov (!%p181_p5, %s2737_s30), 15  ;;  %5414 = vst [vmem:[#allocation11_spill] sm:$0xff] %v3368_v9  ;;  %v3376_v10 = vsub.s32 1, %v3368_v9  ;;  %v3379_v11 = vsub.s32 3, %v3368_v9  ;;  %v3384_v14 = vsub.s32 0, %v3368_v9  ;;  %v3387_v15 = vsub.s32 2, %v3368_v9 }
  0x3b   : > { %s2738_s4 = sshll.u32 %s5675_s30, 1  ;;  %v3390_v16 = vsub.s32 5, %v3368_v9  ;;  %v3393_v17 = vsub.s32 7, %v3368_v9  ;;  %v3400_v20 = vsub.s32 4, %v3368_v9  ;;  %v3441_v37 = vsub.s32 6, %v3368_v9  ;;  %s5181_s25 = scalar_lea.vmem [#allocation5], %s2736_s24 }
  0x3c   : > { %296 = vperm.xlu1 %2968, %v3343_v3   ;;  %205 = vperm.xlu0 %2967, %v3343_v3   ;;  %s3373_s7 = scalar_lea.vmem %s5272_s0, %s2738_s4  ;;  %5415 = vst [vmem:[#allocation12_spill] sm:$0xff] %v3376_v10  ;;  %5416 = vst [vmem:[#allocation13_spill] sm:$0xff] %v3379_v11  ;;  %s2659_s27 = sshll.u32 %s5181_s25, 4  ;;  %s5228_s27 = int_to_ptr.vmem [resolvable:$true] %s2659_s27 }
  0x3d   : > { %v187_v12 = vld [vmem:[%s3373_s7] ss:$2 sm:$0xff]  ;;  %v2739_v13 = vld [vmem:[%s3373_s7 + $0x1] ss:$2 sm:$0xff]  ;;  %5417 = vst [vmem:[#allocation14_spill] sm:$0xff] %v3384_v14  ;;  %5418 = vst [vmem:[#allocation15_spill] sm:$0xff] %v3387_v15  ;;  %s5226_s30 = scalar_lea.hbm %s5275_s3, %s2800_s26 }
  0x3e   : > { %5419 = vst [vmem:[#allocation16_spill] sm:$0xff] %v3390_v16  ;;  %5420 = vst [vmem:[#allocation17_spill] sm:$0xff] %v3393_v17  ;;  %v226_v21 = vrot.slane %v187_v12, %v3376_v10  ;;  %v3404_v22 = vrot.slane %v2739_v13, %v3376_v10  ;;  %v234_v23 = vrot.slane %v187_v12, %v3379_v11  ;;  %s2645_s16 = scalar_lea.sflag [#allocation4], %s177_s20  ;;  %s3144_s4 = scalar_lea.vmem %s5228_s27, 512 }
  0x3f   : > { %5422 = vst [vmem:[#allocation19_spill] sm:$0xff] %v3400_v20  ;;  %v3408_v24 = vrot.slane %v2739_v13, %v3379_v11  ;;  %v222_v25 = vrot.slane %v187_v12, %v3384_v14  ;;  %v3412_v26 = vrot.slane %v2739_v13, %v3384_v14  ;;  %v230_v27 = vrot.slane %v187_v12, %v3387_v15  ;;  %p3145_p6 = scmp.ne.s32.totalorder %s5228_s27, %s3144_s4  ;;  %p5668_p9 = scmp.ne.s32.totalorder %s5404_s22, 0 }
  0x40   : > { %2969 = vset.pattern.permute.xlu1 %v3216_v1  ;;  %210 = vperm.xlu0 %2967, %v3350_v4   ;;  %v3416_v28 = vrot.slane %v2739_v13, %v3387_v15  ;;  %v3419_v29 = vrot.slane %v187_v12, %v3390_v16  ;;  %v3422_v30 = vrot.slane %v2739_v13, %v3390_v16  ;;  %s3229_s5 = smov [#allocation5]  }
  0x41   : > { %215 = vperm.xlu1 %2969, %v3355_v5   ;;  %v3425_v31 = vrot.slane %v187_v12, %v3393_v17  ;;  %v3432_v34 = vrot.slane %v2739_v13, %v3393_v17  ;;  %v3435_v35 = vrot.slane %v187_v12, %v3400_v20  ;;  %v3438_v36 = vrot.slane %v2739_v13, %v3400_v20  ;;  %p3146_p10 = pnand %p3145_p6, %p5668_p9  ;;  %s3148_s6 = sshll.u32 %s3229_s5, 4  ;;  %s3149_s6 = int_to_ptr.vmem [resolvable:$false] %s3148_s6 }
  0x42   : > { %5424 = vst [vmem:[#allocation21_spill] sm:$0xff] %v3441_v37  ;;  %v3476_v58 = vrot.slane %v187_v12, %v3441_v37  ;;  %v3479_v59 = vrot.slane %v2739_v13, %v3441_v37  ;;  %p3151_p2 = scmp.lt.s32.totalorder %s5228_s27, %s3149_s6 }
  0x43   : > { %p3147_p12 = pneg %p3146_p10 }
  0x44   : > { %2970 = vset.pattern.permute.xlu0 %v3215_v0 }
  0x45   : > { %2971 = vset.pattern.permute.xlu1 %v3215_v0  ;;  %300 = vperm.xlu0 %2970, %v3350_v4  }
  0x46   : > { %304 = vperm.xlu1 %2971, %v3355_v5  }
  0x49   : > { %2973 = vset.pattern.permute.xlu0 %v3217_v6 }
  0x4a   : > { %2972 = vset.pattern.permute.xlu1 %v3217_v6  ;;  %417 = vperm.xlu0 %2973, %v3343_v3  }
  0x4b   : > { %413 = vperm.xlu1 %2972, %v3336_v2  }
  0x4f   : > { %421 = vperm.xlu1 %2972, %v3350_v4  }
  0x53   : > { %425 = vperm.xlu1 %2972, %v3355_v5  }
  0xb7   : > { %v3395_v18 = vpop.permute.xlu1 %292  ;;  %v3397_v19 = vpop.permute.xlu0 %200 }
  0xb8   : > { %5421 = vst [vmem:[#allocation18_spill] sm:$0xff] %v3395_v18  ;;  %v260_v38 = vmul.f32 %v226_v21, %v3397_v19  ;;  %v349_v39 = vmul.f32 %v3404_v22, %v3395_v18  ;;  %v262_v40 = vmul.f32 %v234_v23, %v3397_v19  ;;  %v351_v41 = vmul.f32 %v3408_v24, %v3395_v18 }
  0xb9   : > { %v259_v42 = vmul.f32 %v222_v25, %v3397_v19  ;;  %v348_v43 = vmul.f32 %v3412_v26, %v3395_v18  ;;  %v261_v44 = vmul.f32 %v230_v27, %v3397_v19  ;;  %v350_v45 = vmul.f32 %v3416_v28, %v3395_v18 }
  0xba   : > { %v264_v56 = vmul.f32 %v3419_v29, %v3397_v19  ;;  %v353_v57 = vmul.f32 %v3422_v30, %v3395_v18  ;;  %v381_v60 = vadd.f32 %v349_v39, %v260_v38  ;;  %v383_v61 = vadd.f32 %v351_v41, %v262_v40 }
  0xbb   : > { %v3427_v32 = vpop.permute.xlu1 %296  ;;  %v3429_v33 = vpop.permute.xlu0 %205  ;;  %v380_v62 = vadd.f32 %v348_v43, %v259_v42  ;;  %v382_v63 = vadd.f32 %v350_v45, %v261_v44  ;;  %v266_v6 = vmul.f32 %v3425_v31, %v3397_v19  ;;  %v355_v8 = vmul.f32 %v3432_v34, %v3395_v18 }
  0xbc   : > { %5423 = vst [vmem:[#allocation20_spill] sm:$0xff] %v3427_v32  ;;  %v268_v46 = vmul.f32 %v226_v21, %v3429_v33  ;;  %v357_v47 = vmul.f32 %v3404_v22, %v3427_v32  ;;  %v270_v48 = vmul.f32 %v234_v23, %v3429_v33  ;;  %v359_v49 = vmul.f32 %v3408_v24, %v3427_v32 }
  0xbd   : > { %v267_v51 = vmul.f32 %v222_v25, %v3429_v33  ;;  %v356_v52 = vmul.f32 %v3412_v26, %v3427_v32  ;;  %v269_v53 = vmul.f32 %v230_v27, %v3429_v33  ;;  %v358_v54 = vmul.f32 %v3416_v28, %v3427_v32 }
  0xbe   : > { %v272_v0 = vmul.f32 %v3419_v29, %v3429_v33  ;;  %v361_v1 = vmul.f32 %v3422_v30, %v3427_v32  ;;  %v389_v12 = vadd.f32 %v357_v47, %v268_v46  ;;  %v391_v7 = vadd.f32 %v359_v49, %v270_v48 }
  0xbf   : > { %v3461_v50 = vpop.permute.xlu0 %210  ;;  %v388_v13 = vadd.f32 %v356_v52, %v267_v51  ;;  %v390_v17 = vadd.f32 %v358_v54, %v269_v53  ;;  %v385_v40 = vadd.f32 %v353_v57, %v264_v56  ;;  %v274_v41 = vmul.f32 %v3425_v31, %v3429_v33 }
  0xc0   : > { %v3469_v55 = vpop.permute.xlu1 %215  ;;  %v276_v39 = vmul.f32 %v226_v21, %v3461_v50  ;;  %v363_v42 = vmul.f32 %v3432_v34, %v3427_v32  ;;  %v278_v45 = vmul.f32 %v234_v23, %v3461_v50  ;;  %v275_v46 = vmul.f32 %v222_v25, %v3461_v50 }
  0xc1   : > { %v284_v44 = vmul.f32 %v226_v21, %v3469_v55  ;;  %v277_v47 = vmul.f32 %v230_v27, %v3461_v50  ;;  %v286_v48 = vmul.f32 %v234_v23, %v3469_v55  ;;  %v283_v49 = vmul.f32 %v222_v25, %v3469_v55 }
  0xc2   : > { %v285_v51 = vmul.f32 %v230_v27, %v3469_v55  ;;  %v393_v52 = vadd.f32 %v361_v1, %v272_v0  ;;  %v387_v53 = vadd.f32 %v355_v8, %v266_v6  ;;  %v263_v54 = vmul.f32 %v3435_v35, %v3397_v19 }
  0xc3   : > { %v271_v21 = vmul.f32 %v3435_v35, %v3429_v33  ;;  %v352_v56 = vmul.f32 %v3438_v36, %v3395_v18  ;;  %v395_v57 = vadd.f32 %v363_v42, %v274_v41  ;;  %v360_v37 = vmul.f32 %v3438_v36, %v3427_v32 }
  0xc4   : > { %v3489_v38 = vpop.permute.xlu0 %300  ;;  %v265_v23 = vmul.f32 %v3476_v58, %v3397_v19  ;;  %v273_v25 = vmul.f32 %v3476_v58, %v3429_v33  ;;  %v354_v6 = vmul.f32 %v3479_v59, %v3395_v18  ;;  %v362_v8 = vmul.f32 %v3479_v59, %v3427_v32 }
  0xc5   : > { %v3496_v43 = vpop.permute.xlu1 %304  ;;  %v365_v0 = vmul.f32 %v3404_v22, %v3489_v38  ;;  %v367_v1 = vmul.f32 %v3408_v24, %v3489_v38  ;;  %v364_v20 = vmul.f32 %v3412_v26, %v3489_v38  ;;  %v366_v11 = vmul.f32 %v3416_v28, %v3489_v38 }
  0xc6   : > { %v373_v16 = vmul.f32 %v3404_v22, %v3496_v43  ;;  %v375_v9 = vmul.f32 %v3408_v24, %v3496_v43  ;;  %v374_v22 = vmul.f32 %v3416_v28, %v3496_v43 }
  0xc7   : > { %v397_v32 = vadd.f32 %v365_v0, %v276_v39  ;;  %v399_v18 = vadd.f32 %v367_v1, %v278_v45  ;;  %v398_v3 = vadd.f32 %v366_v11, %v277_v47  ;;  %v392_v39 = vadd.f32 %v360_v37, %v271_v21 }
  0xc8   : > { %v386_v45 = vadd.f32 %v354_v6, %v265_v23  ;;  %v282_v1 = vmul.f32 %v3425_v31, %v3461_v50 }
  0xc9   : > { %v3517_v27 = vpop.permute.xlu0 %417 }
  0xca   : > { %v414_v41 = vpop.permute.xlu1 %413  ;;  %v437_v42 = vadd.f32 %v3517_v27, %v389_v12  ;;  %v439_v14 = vadd.f32 %v3517_v27, %v391_v7  ;;  %v372_v12 = vmul.f32 %v3412_v26, %v3496_v43  ;;  %v436_v4 = vadd.f32 %v3517_v27, %v388_v13 }
  0xcb   : > { %v429_v15 = vadd.f32 %v414_v41, %v381_v60  ;;  %v431_v10 = vadd.f32 %v414_v41, %v383_v61  ;;  %v428_v5 = vadd.f32 %v414_v41, %v380_v62  ;;  %v430_v7 = vadd.f32 %v414_v41, %v382_v63 }
  0xcc   : > { %2979 = vtanh.f32 %v437_v42  ;;  %v396_v61 = vadd.f32 %v364_v20, %v275_v46  ;;  %v438_v24 = vadd.f32 %v3517_v27, %v390_v17  ;;  %v405_v62 = vadd.f32 %v373_v16, %v284_v44 }
  0xcd   : > { %2981 = vtanh.f32 %v429_v15  ;;  %v407_v42 = vadd.f32 %v375_v9, %v286_v48  ;;  %v404_v28 = vadd.f32 %v372_v12, %v283_v49  ;;  %v406_v15 = vadd.f32 %v374_v22, %v285_v51 }
  0xce   : > { %v3542_v60 = vpop.permute.xlu1 %421  ;;  %2983 = vtanh.f32 %v431_v10  ;;  %v384_v13 = vadd.f32 %v352_v56, %v263_v54  ;;  %v433_v11 = vadd.f32 %v414_v41, %v385_v40  ;;  %v441_v9 = vadd.f32 %v3517_v27, %v393_v52 }
  0xcf   : > { %2985 = vtanh.f32 %v439_v14  ;;  %v445_v26 = vadd.f32 %v3542_v60, %v397_v32  ;;  %v447_v10 = vadd.f32 %v3542_v60, %v399_v18  ;;  %v394_v14 = vadd.f32 %v362_v8, %v273_v25 }
  0xd0   : > { %2987 = vtanh.f32 %v428_v5  ;;  %v435_v17 = vadd.f32 %v414_v41, %v387_v53  ;;  %v443_v20 = vadd.f32 %v3517_v27, %v395_v57  ;;  %v432_v37 = vadd.f32 %v414_v41, %v384_v13 }
  0xd1   : > { %2989 = vtanh.f32 %v436_v4  ;;  %v444_v4 = vadd.f32 %v3542_v60, %v396_v61  ;;  %v369_v18 = vmul.f32 %v3422_v30, %v3489_v38  ;;  %v446_v40 = vadd.f32 %v3542_v60, %v398_v3 }
  0xd2   : > { %v3546_v0 = vpop.permute.xlu1 %425  ;;  %2991 = vtanh.f32 %v430_v7  ;;  %v440_v44 = vadd.f32 %v3517_v27, %v392_v39  ;;  %v3561_v46 = vadd.f32 %v414_v41, %v386_v45  ;;  %v280_v49 = vmul.f32 %v3419_v29, %v3461_v50 }
  0xd3   : > { %2993 = vtanh.f32 %v438_v24  ;;  %v453_v16 = vadd.f32 %v3546_v0, %v405_v62  ;;  %v455_v5 = vadd.f32 %v3546_v0, %v407_v42  ;;  %v452_v32 = vadd.f32 %v3546_v0, %v404_v28 }
  0xd4   : > { %2995 = vtanh.f32 %v445_v26  ;;  %v454_v48 = vadd.f32 %v3546_v0, %v406_v15  ;;  %v377_v51 = vmul.f32 %v3422_v30, %v3496_v43  ;;  %v371_v3 = vmul.f32 %v3432_v34, %v3489_v38 }
  0xd5   : > { %2997 = vtanh.f32 %v453_v16  ;;  %v379_v54 = vmul.f32 %v3432_v34, %v3496_v43  ;;  %v442_v56 = vadd.f32 %v3517_v27, %v394_v14  ;;  %v288_v57 = vmul.f32 %v3419_v29, %v3469_v55 }
  0xd6   : > { %v3557_v63 = vpop.eup %2979  ;;  %2999 = vtanh.f32 %v447_v10  ;;  %v401_v23 = vadd.f32 %v369_v18, %v280_v49  ;;  %v290_v34 = vmul.f32 %v3425_v31, %v3469_v55  ;;  %v368_v29 = vmul.f32 %v3438_v36, %v3489_v38 }
  0xd7   : > { %v2982_v47 = vpop.eup %2981  ;;  %3001 = vtanh.f32 %v455_v5  ;;  %v409_v27 = vadd.f32 %v377_v51, %v288_v57  ;;  %v403_v22 = vadd.f32 %v371_v3, %v282_v1  ;;  %v279_v24 = vmul.f32 %v3435_v35, %v3461_v50 }
  0xd8   : > { %v3568_v52 = vpop.eup %2983  ;;  %v2801_v53 = vpack.c.bf16 %v3557_v63, %v2982_v47  ;;  %3003 = vtanh.f32 %v444_v4  ;;  %v449_v8 = vadd.f32 %v3542_v60, %v401_v23  ;;  %v411_v7 = vadd.f32 %v379_v54, %v290_v34  ;;  %v3659_v54 = vld [vmem:[#allocation2] sm:$0xff] }
  0xd9   : > { %v2986_v21 = vpop.eup %2985  ;;  %3005 = vtanh.f32 %v452_v32  ;;  %v457_v31 = vadd.f32 %v3546_v0, %v409_v27  ;;  %v376_v62 = vmul.f32 %v3438_v36, %v3496_v43  ;;  %v451_v28 = vadd.f32 %v3542_v60, %v403_v22  ;;  %v3701_v22 = vld [vmem:[#allocation2 + $0x8] sm:$0xff] }
  0xda   : > { %v3578_v30 = vpop.eup %2987  ;;  %2802 = vmatprep.subr.bf16.mxu0 %v2801_v53  ;;  %v2809_v25 = vpack.c.bf16 %v2986_v21, %v3568_v52  ;;  %3007 = vtanh.f32 %v446_v40  ;;  %v287_v15 = vmul.f32 %v3435_v35, %v3469_v55  ;;  %v459_v39 = vadd.f32 %v3546_v0, %v411_v7 }
  0xdb   : > { %v3585_v6 = vpop.eup %2989  ;;  %3009 = vtanh.f32 %v454_v48  ;;  %v400_v45 = vadd.f32 %v368_v29, %v279_v24  ;;  %v370_v36 = vmul.f32 %v3479_v59, %v3489_v38  ;;  %v281_v14 = vmul.f32 %v3476_v58, %v3461_v50 }
  0xdc   : > { %v3590_v41 = vpop.eup %2991  ;;  %2810 = vmatprep.subr.bf16.mxu1 %v2809_v25  ;;  %v2803_v12 = vpack.c.bf16 %v3585_v6, %v3578_v30  ;;  %3011 = vtanh.f32 %v433_v11  ;;  %v378_v35 = vmul.f32 %v3479_v59, %v3496_v43  ;;  %v408_v5 = vadd.f32 %v376_v62, %v287_v15 }
  0xdd   : > { %v3594_v61 = vpop.eup %2993  ;;  %3013 = vtanh.f32 %v441_v9  ;;  %v3623_v9 = vmul.f32 %v2982_v47, %v2982_v47  ;;  %v3627_v4 = vmul.f32 %v3557_v63, %v3557_v63  ;;  %v448_v59 = vadd.f32 %v3542_v60, %v400_v45 }
  0xde   : > { %v3601_v42 = vpop.eup %2995  ;;  %2804 = vmatpush1.bf16.msra.mxu0 %v2803_v12  ;;  %v2811_v26 = vpack.c.bf16 %v3594_v61, %v3590_v41  ;;  %3015 = vtanh.f32 %v435_v17  ;;  %v289_v32 = vmul.f32 %v3476_v58, %v3469_v55  ;;  %v402_v18 = vadd.f32 %v370_v36, %v281_v14 }
  0xdf   : > { %v3608_v13 = vpop.eup %2997  ;;  %3017 = vtanh.f32 %v443_v20  ;;  %v3641_v63 = vmul.f32 %v3568_v52, %v3568_v52  ;;  %v3643_v40 = vmul.f32 %v2986_v21, %v2986_v21  ;;  %v456_v47 = vadd.f32 %v3546_v0, %v408_v5 }
  0xe0   : > { %v3613_v10 = vpop.eup %2999  ;;  %2812 = vmatpush1.bf16.msra.mxu1 %v2811_v26  ;;  %v2805_v11 = vpack.c.bf16 %v3608_v13, %v3601_v42  ;;  %3019 = vtanh.f32 %v432_v37  ;;  %v410_v58 = vadd.f32 %v378_v35, %v289_v32  ;;  %v450_v49 = vadd.f32 %v3542_v60, %v402_v18  ;;  %v3744_v35 = vld [vmem:[#allocation2 + $0x10] sm:$0xff] }
  0xe1   : > { %v3621_v16 = vpop.eup %3001  ;;  %3021 = vtanh.f32 %v440_v44  ;;  %v5312_v51 = vsub.f32 1.0, %v3623_v9  ;;  %v5311_v52 = vsub.f32 1.0, %v3627_v4  ;;  %v5310_v57 = vsub.f32 1.0, %v3641_v63 }
  0xe2   : > { %v3629_v17 = vpop.eup %3003  ;;  %2806 = vmatprep.subr.bf16.mxu0 %v2805_v11  ;;  %v2813_v20 = vpack.c.bf16 %v3621_v16, %v3613_v10  ;;  %3023 = vtanh.f32 %v3561_v46  ;;  %v458_v21 = vadd.f32 %v3546_v0, %v410_v58  ;;  %v5309_v23 = vsub.f32 1.0, %v3643_v40 }
  0xe3   : > { %v3637_v37 = vpop.eup %3005  ;;  %3025 = vtanh.f32 %v442_v56  ;;  %v3664_v56 = vmul.f32 %v3578_v30, %v3578_v30  ;;  %v3672_v25 = vmul.f32 %v3585_v6, %v3585_v6  ;;  %v3685_v34 = vmul.f32 %v5312_v51, %v3397_v19 }
  0xe4   : > { %v3645_v44 = vpop.eup %3007  ;;  %2814 = vmatprep.subr.bf16.mxu1 %v2813_v20  ;;  %v2807_v46 = vpack.c.bf16 %v3637_v37, %v3629_v17  ;;  %3027 = vtanh.f32 %v449_v8  ;;  %v3690_v6 = vmul.f32 %v5311_v52, %v3429_v33  ;;  %v3694_v27 = vmul.f32 %v3590_v41, %v3590_v41 }
  0xe5   : > { %v3650_v48 = vpop.eup %3009  ;;  %3029 = vtanh.f32 %v457_v31  ;;  %v5425_v12 = vmov 0.0   ;;  %v5308_v7 = vsub.f32 1.0, %v3664_v56  ;;  %v3711_v41 = vmul.f32 %v5310_v57, %v3397_v19 }
  0xe6   : > { %v3655_v53 = vpop.eup %3011  ;;  %2808 = vmatpush1.bf16.msra.mxu0 %v2807_v46  ;;  %v2815_v3 = vpack.c.bf16 %v3650_v48, %v3645_v44  ;;  %3031 = vtanh.f32 %v451_v28  ;;  %v3716_v24 = vmul.f32 %v5309_v23, %v3429_v33  ;;  %v5307_v62 = vsub.f32 1.0, %v3672_v25 }
  0xe7   : > { %v3666_v60 = vpop.eup %3013  ;;  %3033 = vtanh.f32 %v459_v39  ;;  %v3726_v15 = vmul.f32 %v3594_v61, %v3594_v61  ;;  %v2833_v45 = vpack.c.bf16 %v3690_v6, %v3685_v34  ;;  %v5306_v36 = vsub.f32 1.0, %v3694_v27 }
  0xe8   : > { %v3674_v1 = vpop.eup %3015  ;;  %2816 = vmatpush1.bf16.msra.mxu1 %v2815_v3  ;;  %v2817_v0 = vpack.c.bf16 %v3666_v60, %v3655_v53  ;;  %3035 = vtanh.f32 %v448_v59  ;;  %v3737_v11 = vmul.f32 %v3608_v13, %v3608_v13  ;;  %v3749_v5 = vmul.f32 %v5308_v7, %v3397_v19  ;;  %v5426_v59 = vld [vmem:[#allocation8_spill] sm:$0xff] }
  0xe9   : > { %v3678_v30 = vpop.eup %3017  ;;  %2740 = vmatmul.mubr.msk.f32.vlgmr.msra.gmra.mrb[0].mxu0 %vm636_vm0, %v3659_v54  ;;  %3037 = vtanh.f32 %v456_v47  ;;  %v3753_v20 = vmul.f32 %v3621_v16, %v3621_v16  ;;  %v3764_v32 = vmul.f32 %v5307_v62, %v3429_v33  ;;  %v3768_v18 = vmul.f32 %v3601_v42, %v3601_v42 }
  0xea   : > { %v3696_v8 = vpop.eup %3019  ;;  %2818 = vmatprep.subr.bf16.mxu0 %v2817_v0  ;;  %v2825_v29 = vpack.c.bf16 %v3678_v30, %v3674_v1  ;;  %719 = vmatprep.mubr.f32.mxu0 %v5425_v12  ;;  %3039 = vtanh.f32 %v450_v49  ;;  %v3219_v46 = vmov 3   ;;  %v5313_v58 = vsub.f32 1.0, %v3726_v15 }
  0xeb   : > { %v3704_v31 = vpop.eup %3021  ;;  %2744 = vmatmul.mubr.msk.f32.vlgmr.msra.gmra.mrb[0].mxu1 %vm636_vm0, %v3659_v54  ;;  %3041 = vtanh.f32 %v458_v21  ;;  %2974 = vset.pattern.permute.xlu0 %v3219_v46  ;;  %v3778_v49 = vmul.f32 %v3613_v10, %v3613_v10  ;;  %v3782_v42 = vmul.f32 %v3637_v37, %v3637_v37  ;;  %v3791_v21 = vmul.f32 %v5306_v36, %v3397_v19 }
  0xec   : > { %v3719_v26 = vpop.eup %3023  ;;  %2826 = vmatprep.subr.bf16.mxu1 %v2825_v29  ;;  %v2819_v28 = vpack.c.bf16 %v3704_v31, %v3696_v8  ;;  %808 = vmatprep.mubr.f32.mxu1 %v5425_v12  ;;  %v5314_v0 = vsub.f32 1.0, %v3737_v11  ;;  %v3796_v10 = vmul.f32 %v3655_v53, %v3655_v53  ;;  %v3800_v37 = vmul.f32 %v3666_v60, %v3666_v60 }
  0xed   : > { %v3728_v39 = vpop.eup %3025  ;;  %2741 = vmatmul.mubr.msk.f32.gmra.mrb[2].mxu0 %vm636_vm0, %v3701_v22  ;;  %621 = vperm.xlu0 %2974, %v3336_v2   ;;  %v5315_v36 = vsub.f32 1.0, %v3753_v20  ;;  %v3813_v53 = vmul.f32 %v3629_v17, %v3629_v17  ;;  %v3817_v60 = vmul.f32 %v3650_v48, %v3650_v48  ;;  %v3826_v7 = vmul.f32 %v3645_v44, %v3645_v44 }
  0xee   : > { %v3739_v14 = vpop.eup %3027  ;;  %2820 = vmatpush1.bf16.msra.mxu0 %v2819_v28  ;;  %v2827_v61 = vpack.c.bf16 %v3728_v39, %v3719_v26  ;;  %725 = vmatprep.mubr.f32.mxu0 %v5425_v12  ;;  %v3830_v23 = vmul.f32 %v3674_v1, %v3674_v1  ;;  %v3834_v17 = vmul.f32 %v3678_v30, %v3678_v30  ;;  %v5317_v1 = vsub.f32 1.0, %v3778_v49 }
  0xef   : > { %v3755_v13 = vpop.eup %3029  ;;  %2745 = vmatmul.mubr.msk.f32.gmra.mrb[2].mxu1 %vm636_vm0, %v3701_v22  ;;  %2975 = vset.pattern.permute.xlu1 %v3219_v46  ;;  %v566_v44 = vmul.f32 %v5313_v58, %v3429_v33  ;;  %v2835_v30 = vpack.c.bf16 %v3764_v32, %v3749_v5  ;;  %v581_v46 = vmul.f32 %v5314_v0, %v3469_v55  ;;  %v540_v32 = vsub.f32 1.0, %v3813_v53 }
  0xf0   : > { %v3770_v16 = vpop.eup %3031  ;;  %2828 = vmatpush1.bf16.msra.mxu1 %v2827_v61  ;;  %v2821_v47 = vpack.c.bf16 %v3755_v13, %v3739_v14  ;;  %814 = vmatprep.mubr.f32.mxu1 %v5425_v12  ;;  %v3808_v61 = vld [vmem:[#allocation2 + $0x18] sm:$0xff]  ;;  %v583_v5 = vmul.f32 %v5315_v36, %v3469_v55  ;;  %v5325_v58 = vsub.f32 1.0, %v3826_v7  ;;  %v575_v34 = vmul.f32 %v5317_v1, %v3461_v50 }
  0xf1   : > { %v3784_v3 = vpop.eup %3033  ;;  %2742 = vmatmul.mubr.msk.f32.gmra.mrb[4].mxu0 %vm636_vm0, %v3744_v35  ;;  %625 = vperm.xlu1 %2975, %v5426_v59   ;;  %v2843_v0 = vpack.c.bf16 %v566_v44, %v3791_v21  ;;  %v5427_v6 = vsub.f32 1.0, %v3782_v42  ;;  %v5429_v36 = vsub.f32 1.0, %v3796_v10  ;;  %v5430_v44 = vsub.f32 1.0, %v3800_v37 }
  0xf2   : > { %v3803_v29 = vpop.eup %3035  ;;  %2822 = vmatprep.subr.bf16.mxu0 %v2821_v47  ;;  %v2829_v28 = vpack.c.bf16 %v3784_v3, %v3770_v16  ;;  %731 = vmatprep.mubr.f32.mxu0 %v5425_v12  ;;  %v5316_v47 = vsub.f32 1.0, %v3768_v18 }
  0xf3   : > { %v3819_v62 = vpop.eup %3037  ;;  %2746 = vmatmul.mubr.msk.f32.gmra.mrb[4].mxu1 %vm636_vm0, %v3744_v35  ;;  %v561_v21 = vmul.f32 %v5429_v36, %v3397_v19  ;;  %v569_v1 = vmul.f32 %v5430_v44, %v3429_v33  ;;  %v574_v36 = vmul.f32 %v5325_v58, %v3461_v50  ;;  %v5436_v58 = vld [vmem:[#allocation20_spill] sm:$0xff] }
  0xf4   : > { %v3836_v48 = vpop.eup %3039  ;;  %2830 = vmatprep.subr.bf16.mxu1 %v2829_v28  ;;  %v2823_v57 = vpack.c.bf16 %v3819_v62, %v3803_v29  ;;  %820 = vmatprep.mubr.f32.mxu1 %v5425_v12  ;;  %v2845_v28 = vpack.c.bf16 %v583_v5, %v575_v34  ;;  %v5433_v5 = vsub.f32 1.0, %v3834_v17 }
  0xf5   : > { %v3846_v51 = vpop.eup %3041  ;;  %2743 = vmatmul.mubr.msk.f32.gmra.mrb[6].mxu0 %vm636_vm0, %v3808_v61  ;;  %v2849_v44 = vpack.c.bf16 %v569_v1, %v561_v21 }
  0xf6   : > { %2824 = vmatpush1.bf16.msra.mxu0 %v2823_v57  ;;  %v2831_v52 = vpack.c.bf16 %v3846_v51, %v3836_v48  ;;  %891 = vmatprep.mubr.f32.mxu0 %v5425_v12  ;;  %v573_v57 = vmul.f32 %v5316_v47, %v3461_v50  ;;  %v5428_v47 = vpack.c.bf16 %v3716_v24, %v3711_v41  ;;  %v5431_v24 = vsub.f32 1.0, %v3817_v60 }
  0xf7   : > { %2834 = vmatprep.subr.bf16.mxu0 %v2833_v45  ;;  %2747 = vmatmul.mubr.msk.f32.gmra.mrb[6].mxu1 %vm636_vm0, %v3808_v61  ;;  %v580_v45 = vmul.f32 %v5427_v6, %v3469_v55  ;;  %v572_v41 = vmul.f32 %v540_v32, %v3461_v50  ;;  %v3917_v6 = vmul.f32 %v3696_v8, %v3696_v8 }
  0xf8   : > { %2832 = vmatpush1.bf16.msra.mxu1 %v2831_v52  ;;  %980 = vmatprep.mubr.f32.mxu1 %v5425_v12  ;;  %v2837_v52 = vpack.c.bf16 %v581_v46, %v573_v57  ;;  %v571_v57 = vmul.f32 %v5433_v5, %v3429_v33  ;;  %v3932_v8 = vmul.f32 %v3719_v26, %v3719_v26 }
  0xf9   : > { %2842 = vmatprep.subr.bf16.mxu1 %v5428_v47  ;;  %2748 = vmatmul.mubr.msk.f32.vlgmr.msra.gmra.mrb[8].mxu0 %vm636_vm0, %v3659_v54  ;;  %v582_v47 = vmul.f32 %v5431_v24, %v3469_v55  ;;  %v2839_v34 = vpack.c.bf16 %v580_v45, %v572_v41  ;;  %v3927_v24 = vmul.f32 %v3755_v13, %v3755_v13  ;;  %v5324_v26 = vsub.f32 1.0, %v3917_v6 }
  0xfa   : > { %2836 = vmatpush1.bf16.msra.mxu0 %v2835_v30  ;;  %897 = vmatprep.mubr.f32.mxu0 %v5425_v12  ;;  %v5432_v30 = vsub.f32 1.0, %v3830_v23  ;;  %v3942_v13 = vmul.f32 %v3739_v14, %v3739_v14  ;;  %v3953_v45 = vmul.f32 %v3819_v62, %v3819_v62  ;;  %v5320_v21 = vsub.f32 1.0, %v3932_v8 }
  0xfb   : > { %2752 = vmatmul.mubr.msk.f32.vlgmr.msra.gmra.mrb[8].mxu1 %vm636_vm0, %v3659_v54  ;;  %2838 = vmatprep.subr.bf16.mxu0 %v2837_v52  ;;  %v3921_v52 = vmul.f32 %v3704_v31, %v3704_v31  ;;  %v3936_v31 = vmul.f32 %v3728_v39, %v3728_v39  ;;  %v5318_v14 = vsub.f32 1.0, %v3927_v24  ;;  %v3967_v62 = vmul.f32 %v3803_v29, %v3803_v29 }
  0xfc   : > { %v563_v46 = vmul.f32 %v5432_v30, %v3397_v19  ;;  %2844 = vmatpush1.bf16.msra.mxu1 %v2843_v0  ;;  %986 = vmatprep.mubr.f32.mxu1 %v5425_v12  ;;  %v2847_v0 = vpack.c.bf16 %v582_v47, %v574_v36  ;;  %v3971_v47 = vmul.f32 %v3846_v51, %v3846_v51  ;;  %v5326_v51 = vsub.f32 1.0, %v3953_v45 }
  0xfd   : > { %2846 = vmatprep.subr.bf16.mxu1 %v2845_v28  ;;  %2749 = vmatmul.mubr.msk.f32.gmra.mrb[10].mxu0 %vm636_vm0, %v3701_v22  ;;  %v3946_v28 = vmul.f32 %v3784_v3, %v3784_v3  ;;  %v5322_v39 = vsub.f32 1.0, %v3921_v52  ;;  %v3960_v3 = vmul.f32 %v3770_v16, %v3770_v16  ;;  %v5319_v41 = vsub.f32 1.0, %v3936_v31 }
  0xfe   : > { %2840 = vmatpush1.bf16.msra.mxu0 %v2839_v34  ;;  %903 = vmatprep.mubr.f32.mxu0 %v5425_v12  ;;  %v2857_v1 = vpack.c.bf16 %v571_v57, %v563_v46  ;;  %v5321_v16 = vsub.f32 1.0, %v3942_v13  ;;  %v560_v30 = vmul.f32 %v5324_v26, %v3397_v19  ;;  %v3987_v46 = vmul.f32 %v3836_v48, %v3836_v48 }
  0xff   : > { %2753 = vmatmul.mubr.msk.f32.gmra.mrb[10].mxu1 %vm636_vm0, %v3701_v22  ;;  %2850 = vmatprep.subr.bf16.mxu0 %v2849_v44  ;;  %v5323_v36 = vsub.f32 1.0, %v3946_v28  ;;  %v568_v29 = vmul.f32 %v5322_v39, %v3429_v33  ;;  %v585_v5 = vmul.f32 %v5318_v14, %v3469_v55  ;;  %v547_v57 = vsub.f32 1.0, %v3960_v3  ;;  %v5434_v39 = vld [vmem:[#allocation18_spill] sm:$0xff] }
 0x100   : > { %2848 = vmatpush1.bf16.msra.mxu1 %v2847_v0  ;;  %992 = vmatprep.mubr.f32.mxu1 %v5425_v12  ;;  %v562_v34 = vmul.f32 %v5320_v21, %v3397_v19  ;;  %v570_v48 = vmul.f32 %v5319_v41, %v3429_v33  ;;  %v544_v44 = vsub.f32 1.0, %v3967_v62  ;;  %v554_v0 = vsub.f32 1.0, %v3971_v47 }
 0x101   : > { %2858 = vmatprep.subr.bf16.mxu1 %v2857_v1  ;;  %2750 = vmatmul.mubr.msk.f32.gmra.mrb[12].mxu0 %vm636_vm0, %v3744_v35  ;;  %v577_v1 = vmul.f32 %v5321_v16, %v3461_v50  ;;  %v587_v14 = vmul.f32 %v5323_v36, %v3469_v55  ;;  %v2851_v19 = vpack.c.bf16 %v568_v29, %v560_v30  ;;  %v546_v41 = vsub.f32 1.0, %v3987_v46 }
 0x102   : > { %909 = vmatprep.mubr.f32.mxu0 %v5425_v12  ;;  %v584_v33 = vmul.f32 %v5326_v51, %v3469_v55  ;;  %v579_v16 = vmul.f32 %v547_v57, %v3461_v50  ;;  %v5435_v36 = vsub.f32 1.0, %v3623_v9  ;;  %v5437_v30 = vsub.f32 1.0, %v3627_v4 }
 0x103   : > { %2754 = vmatmul.mubr.msk.f32.gmra.mrb[12].mxu1 %vm636_vm0, %v3744_v35  ;;  %v2853_v21 = vpack.c.bf16 %v585_v5, %v577_v1  ;;  %v2859_v51 = vpack.c.bf16 %v570_v48, %v562_v34  ;;  %v576_v5 = vmul.f32 %v544_v44, %v3461_v50  ;;  %v586_v1 = vmul.f32 %v554_v0, %v3469_v55 }
 0x104   : > { %998 = vmatprep.mubr.f32.mxu1 %v5425_v12  ;;  %v589_v26 = vmul.f32 %v5435_v36, %v5434_v39  ;;  %v597_v29 = vmul.f32 %v5437_v30, %v5436_v58  ;;  %v2861_v9 = vpack.c.bf16 %v587_v14, %v579_v16  ;;  %v5438_v4 = vsub.f32 1.0, %v3641_v63 }
 0x105   : > { %2751 = vmatmul.mubr.msk.f32.gmra.mrb[14].mxu0 %vm636_vm0, %v3808_v61  ;;  %v5439_v34 = vsub.f32 1.0, %v3643_v40  ;;  %v578_v55 = vmul.f32 %v546_v41, %v3461_v50  ;;  %v5440_v50 = vld [vmem:[#allocation9_spill] sm:$0xff]  ;;  %v5444_v30 = vsub.f32 1.0, %v3737_v11 }
 0x106   : > { %1069 = vmatprep.mubr.f32.mxu0 %v5425_v12  ;;  %v591_v36 = vmul.f32 %v5438_v4, %v5434_v39  ;;  %v2865_v14 = vpack.c.bf16 %v597_v29, %v589_v26  ;;  %629 = vperm.xlu1 %2975, %v5440_v50   ;;  %v5441_v26 = vld [vmem:[#allocation10_spill] sm:$0xff]  ;;  %v3220_v4 = vmov 4  }
 0x107   : > { %2755 = vmatmul.mubr.msk.f32.gmra.mrb[14].mxu1 %vm636_vm0, %v3808_v61  ;;  %v599_v48 = vmul.f32 %v5439_v34, %v5436_v58  ;;  %v2863_v63 = vpack.c.bf16 %v586_v1, %v578_v55  ;;  %633 = vperm.xlu0 %2974, %v5441_v26   ;;  %v613_v29 = vmul.f32 %v5444_v30, %v3496_v43  ;;  %v5455_v26 = vsub.f32 1.0, %v3834_v17 }
 0x108   : > { %1158 = vmatprep.mubr.f32.mxu1 %v5425_v12 }
 0x109   : > { %2756 = vmatmul.mubr.msk.f32.vlgmr.msra.gmra.mrb[16].mxu0 %vm636_vm0, %v3659_v54  ;;  %v2873_v40 = vpack.c.bf16 %v599_v48, %v591_v36  ;;  %v5448_v36 = vsub.f32 1.0, %v3753_v20  ;;  %v5451_v20 = vsub.f32 1.0, %v3796_v10 }
 0x10a   : > { %2852 = vmatpush1.bf16.msra.mxu0 %v2851_v19  ;;  %1075 = vmatprep.mubr.f32.mxu0 %v5425_v12  ;;  %v2855_v19 = vpack.c.bf16 %v584_v33, %v576_v5  ;;  %v5445_v5 = vsub.f32 1.0, %v3694_v27 }
 0x10b   : > { %2760 = vmatmul.mubr.msk.f32.vlgmr.msra.gmra.mrb[16].mxu1 %vm636_vm0, %v3659_v54  ;;  %2854 = vmatprep.subr.bf16.mxu0 %v2853_v21  ;;  %v5442_v21 = vsub.f32 1.0, %v3664_v56  ;;  %v5446_v56 = vsub.f32 1.0, %v3726_v15  ;;  %v615_v34 = vmul.f32 %v5448_v36, %v3496_v43  ;;  %v5449_v15 = vsub.f32 1.0, %v3778_v49 }
 0x10c   : > { %2860 = vmatpush1.bf16.msra.mxu1 %v2859_v51  ;;  %1164 = vmatprep.mubr.f32.mxu1 %v5425_v12  ;;  %v5443_v51 = vsub.f32 1.0, %v3672_v25  ;;  %v590_v1 = vmul.f32 %v5445_v5, %v5434_v39  ;;  %v5447_v25 = vsub.f32 1.0, %v3768_v18 }
 0x10d   : > { %2862 = vmatprep.subr.bf16.mxu1 %v2861_v9  ;;  %2757 = vmatmul.mubr.msk.f32.gmra.mrb[18].mxu0 %vm636_vm0, %v3701_v22  ;;  %v588_v16 = vmul.f32 %v5442_v21, %v5434_v39  ;;  %v598_v9 = vmul.f32 %v5446_v56, %v5436_v58  ;;  %v607_v48 = vmul.f32 %v5449_v15, %v3489_v38  ;;  %v5459_v56 = vsub.f32 1.0, %v3927_v24 }
 0x10e   : > { %2856 = vmatpush1.bf16.msra.mxu0 %v2855_v19  ;;  %1081 = vmatprep.mubr.f32.mxu0 %v5425_v12  ;;  %v596_v33 = vmul.f32 %v5443_v51, %v5436_v58  ;;  %v605_v11 = vmul.f32 %v5447_v25, %v3489_v38  ;;  %v5450_v19 = vsub.f32 1.0, %v3782_v42  ;;  %v604_v42 = vmul.f32 %v540_v32, %v3489_v38 }
 0x10f   : > { %2761 = vmatmul.mubr.msk.f32.gmra.mrb[18].mxu1 %vm636_vm0, %v3701_v22  ;;  %2866 = vmatprep.subr.bf16.mxu0 %v2865_v14  ;;  %v5452_v14 = vsub.f32 1.0, %v3800_v37  ;;  %v2875_v49 = vpack.c.bf16 %v598_v9, %v590_v1  ;;  %v2877_v10 = vpack.c.bf16 %v615_v34, %v607_v48  ;;  %v603_v21 = vmul.f32 %v5455_v26, %v5436_v58  ;;  %v3112_v1 = vld [vmem:[%s5274_s2] sm:$0xff] }
 0x110   : > { %2864 = vmatpush1.bf16.msra.mxu1 %v2863_v63  ;;  %1170 = vmatprep.mubr.f32.mxu1 %v5425_v12  ;;  %v2867_v27 = vpack.c.bf16 %v596_v33, %v588_v16  ;;  %v612_v55 = vmul.f32 %v5450_v19, %v3496_v43  ;;  %v2869_v18 = vpack.c.bf16 %v613_v29, %v605_v11  ;;  %v3221_v51 = vmov 5   ;;  %v3113_v11 = vld [vmem:[%s5274_s2 + $0x18] sm:$0xff] }
 0x111   : > { %2874 = vmatprep.subr.bf16.mxu1 %v2873_v40  ;;  %2758 = vmatmul.mubr.msk.f32.gmra.mrb[20].mxu0 %vm636_vm0, %v3744_v35  ;;  %v601_v63 = vmul.f32 %v5452_v14, %v5436_v58  ;;  %v5453_v40 = vsub.f32 1.0, %v3817_v60  ;;  %v5456_v60 = vsub.f32 1.0, %v3826_v7  ;;  %v3111_v7 = vld [vmem:[%s5274_s2 + $0x10] sm:$0xff]  ;;  %v5457_v33 = vsub.f32 1.0, %v3917_v6 }
 0x112   : > { %1087 = vmatprep.mubr.f32.mxu0 %v5425_v12  ;;  %2976 = vset.pattern.permute.xlu1 %v3220_v4  ;;  %v2871_v53 = vpack.c.bf16 %v612_v55, %v604_v42  ;;  %v5458_v29 = vsub.f32 1.0, %v3921_v52  ;;  %v617_v9 = vmul.f32 %v5459_v56, %v3496_v43  ;;  %v5460_v6 = vsub.f32 1.0, %v3932_v8 }
 0x113   : > { %2762 = vmatmul.mubr.msk.f32.gmra.mrb[20].mxu1 %vm636_vm0, %v3744_v35  ;;  %1878 = vperm.xlu1 %2976, %v3336_v2   ;;  %v593_v2 = vmul.f32 %v5451_v20, %v5434_v39  ;;  %v614_v50 = vmul.f32 %v5453_v40, %v3496_v43  ;;  %v606_v32 = vmul.f32 %v5456_v60, %v3489_v38  ;;  %v5461_v52 = vsub.f32 1.0, %v3936_v31 }
 0x114   : > { %1176 = vmatprep.mubr.f32.mxu1 %v5425_v12  ;;  %2977 = vset.pattern.permute.xlu0 %v3220_v4  ;;  %v592_v30 = vmul.f32 %v5457_v33, %v5434_v39  ;;  %v600_v5 = vmul.f32 %v5458_v29, %v5436_v58  ;;  %v594_v4 = vmul.f32 %v5460_v6, %v5434_v39  ;;  %v5462_v24 = vsub.f32 1.0, %v3942_v13 }
 0x115   : > { %2759 = vmatmul.mubr.msk.f32.gmra.mrb[22].mxu0 %vm636_vm0, %v3808_v61  ;;  %1882 = vperm.xlu0 %2977, %v5426_v59   ;;  %v5454_v59 = vsub.f32 1.0, %v3830_v23  ;;  %v2881_v16 = vpack.c.bf16 %v601_v63, %v593_v2  ;;  %v2879_v23 = vpack.c.bf16 %v614_v50, %v606_v32  ;;  %v602_v25 = vmul.f32 %v5461_v52, %v5436_v58 }
 0x116   : > { %1247 = vmatprep.mubr.f32.mxu0 %v5425_v12  ;;  %v609_v36 = vmul.f32 %v5462_v24, %v3489_v38  ;;  %v5463_v8 = vsub.f32 1.0, %v3946_v28  ;;  %v2883_v31 = vpack.c.bf16 %v600_v5, %v592_v30  ;;  %v5464_v58 = vsub.f32 1.0, %v3953_v45 }
 0x117   : > { %2763 = vmatmul.mubr.msk.f32.gmra.mrb[22].mxu1 %vm636_vm0, %v3808_v61  ;;  %v595_v37 = vmul.f32 %v5454_v59, %v5434_v39  ;;  %1886 = vperm.xlu1 %2976, %v3111_v7   ;;  %v611_v13 = vmul.f32 %v547_v57, %v3489_v38  ;;  %v2891_v15 = vpack.c.bf16 %v602_v25, %v594_v4  ;;  %v3222_v55 = vmov 2102212464  }
 0x118   : > { %1336 = vmatprep.mubr.f32.mxu1 %v5425_v12  ;;  %v619_v39 = vmul.f32 %v5463_v8, %v3496_v43  ;;  %v616_v34 = vmul.f32 %v5464_v58, %v3496_v43  ;;  %v608_v28 = vmul.f32 %v544_v44, %v3489_v38  ;;  %v618_v45 = vmul.f32 %v554_v0, %v3496_v43 }
 0x119   : > { %2764 = vmatmul.mubr.msk.f32.vlgmr.msra.gmra.mrb[24].mxu0 %vm636_vm0, %v3659_v54  ;;  %v2889_v17 = vpack.c.bf16 %v603_v21, %v595_v37  ;;  %2978 = vset.pattern.permute.xlu0 %v3221_v51  ;;  %v610_v57 = vmul.f32 %v546_v41, %v3489_v38  ;;  %v4222_v38 = vld [vmem:[%s3373_s7] ss:$2 sm:$0xff]  ;;  %v3223_v2 = vmov 683565275   ;;  %v3224_v63 = vmov 2475754826  }
 0x11a   : > { %2868 = vmatpush1.bf16.msra.mxu0 %v2867_v27  ;;  %1253 = vmatprep.mubr.f32.mxu0 %v5425_v12  ;;  %v2885_v27 = vpack.c.bf16 %v617_v9, %v609_v36  ;;  %v2893_v48 = vpack.c.bf16 %v619_v39, %v611_v13  ;;  %v2887_v3 = vpack.c.bf16 %v616_v34, %v608_v28  ;;  %v4225_v43 = vmul.f32 3.1415927, %v4222_v38 }
 0x11b   : > { %2768 = vmatmul.mubr.msk.f32.vlgmr.msra.gmra.mrb[24].mxu1 %vm636_vm0, %v3659_v54  ;;  %2870 = vmatprep.subr.bf16.mxu0 %v2869_v18  ;;  %v2895_v62 = vpack.c.bf16 %v618_v45, %v610_v57  ;;  %v3225_v40 = vmov 2131351028   ;;  %v3226_v37 = vmov 920167782   ;;  %v3227_v32 = vmov 1326507024  }
 0x11c   : > { %2876 = vmatpush1.bf16.msra.mxu1 %v2875_v49  ;;  %1342 = vmatprep.mubr.f32.mxu1 %v5425_v12  ;;  %v2303_v19 = vand.u32 2147483647, %v4225_v43  ;;  %vm2305_vm8 = vcmp.lt.s32.totalorder %v4225_v43, 0  ;;  %vm2395_vm13 = vweird.f32 %v4225_v43 }
 0x11d   : > { %2878 = vmatprep.subr.bf16.mxu1 %v2877_v10  ;;  %2765 = vmatmul.mubr.msk.f32.gmra.mrb[26].mxu0 %vm636_vm0, %v3701_v22 }
 0x11e   : > { %2872 = vmatpush1.bf16.msra.mxu0 %v2871_v53  ;;  %1259 = vmatprep.mubr.f32.mxu0 %v5425_v12  ;;  %vm2304_vm9 = vcmp.le.f32.partialorder %v2303_v19, 0.7853982 }
 0x11f   : > { %2769 = vmatmul.mubr.msk.f32.gmra.mrb[26].mxu1 %vm636_vm0, %v3701_v22  ;;  %2882 = vmatprep.subr.bf16.mxu0 %v2881_v16 }
 0x120   : > { %2880 = vmatpush1.bf16.msra.mxu1 %v2879_v23  ;;  %1348 = vmatprep.mubr.f32.mxu1 %v5425_v12 }
 0x121   : > { %2890 = vmatprep.subr.bf16.mxu1 %v2889_v17  ;;  %2766 = vmatmul.mubr.msk.f32.gmra.mrb[28].mxu0 %vm636_vm0, %v3744_v35 }
 0x122   : > { %1265 = vmatprep.mubr.f32.mxu0 %v5425_v12  ;;  %1998 = vperm.xlu0 %2978, %v3112_v1  }
 0x123   : > { %2770 = vmatmul.mubr.msk.f32.gmra.mrb[28].mxu1 %vm636_vm0, %v3744_v35  ;;  %1890 = vperm.xlu1 %2976, %v3113_v11  }
 0x124   : > { %1354 = vmatprep.mubr.f32.mxu1 %v5425_v12 }
 0x125   : > { %2767 = vmatmul.mubr.msk.f32.gmra.mrb[30].mxu0 %vm636_vm0, %v3808_v61 }
 0x126   : > { %1425 = vmatprep.mubr.f32.mxu0 %v5425_v12 }
 0x127   : > { %2771 = vmatmul.mubr.msk.f32.gmra.mrb[30].mxu1 %vm636_vm0, %v3808_v61 }
 0x128   : > { %1514 = vmatprep.mubr.f32.mxu1 %v5425_v12 }
 0x129   : > { %2772 = vmatmul.mubr.msk.f32.vlgmr.msra.gmra.mrb[32].mxu0 %vm636_vm0, %v3659_v54 }
 0x12a   : > { %2884 = vmatpush1.bf16.msra.mxu0 %v2883_v31  ;;  %1431 = vmatprep.mubr.f32.mxu0 %v5425_v12 }
 0x12b   : > { %2776 = vmatmul.mubr.msk.f32.vlgmr.msra.gmra.mrb[32].mxu1 %vm636_vm0, %v3659_v54  ;;  %2886 = vmatprep.subr.bf16.mxu0 %v2885_v27 }
 0x12c   : > { %2892 = vmatpush1.bf16.msra.mxu1 %v2891_v15  ;;  %1520 = vmatprep.mubr.f32.mxu1 %v5425_v12 }
 0x12d   : > { %2894 = vmatprep.subr.bf16.mxu1 %v2893_v48  ;;  %2773 = vmatmul.mubr.msk.f32.gmra.mrb[34].mxu0 %vm636_vm0, %v3701_v22 }
 0x12e   : > { %2888 = vmatpush1.bf16.msra.mxu0 %v2887_v3  ;;  %1437 = vmatprep.mubr.f32.mxu0 %v5425_v12 }
 0x12f   : > { %2777 = vmatmul.mubr.msk.f32.gmra.mrb[34].mxu1 %vm636_vm0, %v3701_v22 }
 0x130   : > { %2896 = vmatpush1.bf16.msra.mxu1 %v2895_v62  ;;  %1526 = vmatprep.mubr.f32.mxu1 %v5425_v12 }
 0x131   : > { %2774 = vmatmul.mubr.msk.f32.gmra.mrb[36].mxu0 %vm636_vm0, %v3744_v35 }
 0x132   : > { %1443 = vmatprep.mubr.f32.mxu0 %v5425_v12 }
 0x133   : > { %2778 = vmatmul.mubr.msk.f32.gmra.mrb[36].mxu1 %vm636_vm0, %v3744_v35 }
 0x134   : > { %1532 = vmatprep.mubr.f32.mxu1 %v5425_v12 }
 0x135   : > { %2775 = vmatmul.mubr.msk.f32.gmra.mrb[38].mxu0 %vm636_vm0, %v3808_v61 }
 0x136   : > { %1603 = vmatprep.mubr.f32.mxu0 %v5425_v12 }
 0x137   : > { %2779 = vmatmul.mubr.msk.f32.gmra.mrb[38].mxu1 %vm636_vm0, %v3808_v61 }
 0x138   : > { %1692 = vmatprep.mubr.f32.mxu1 %v5425_v12 }
 0x139   : > { %2780 = vmatmul.mubr.msk.f32.vlgmr.msra.gmra.mrb[40].mxu0 %vm636_vm0, %v3659_v54 }
 0x13a   : > { %1609 = vmatprep.mubr.f32.mxu0 %v5425_v12 }
 0x13b   : > { %2784 = vmatmul.mubr.msk.f32.vlgmr.msra.gmra.mrb[40].mxu1 %vm636_vm0, %v3659_v54  ;;  %v2306_v54 = vand.u32 2139095040, %v4225_v43 }
 0x13c   : > { %1698 = vmatprep.mubr.f32.mxu1 %v5425_v12 }
 0x13d   : > { %2781 = vmatmul.mubr.msk.f32.gmra.mrb[42].mxu0 %vm636_vm0, %v3701_v22  ;;  %v2307_v41 = vshrl.u32 %v2306_v54, 23 }
 0x13e   : > { %1615 = vmatprep.mubr.f32.mxu0 %v5425_v12 }
 0x13f   : > { %2785 = vmatmul.mubr.msk.f32.gmra.mrb[42].mxu1 %vm636_vm0, %v3701_v22  ;;  %v2791_v22 = vadd.s32 4294967169, %v2307_v41 }
 0x140   : > { %1704 = vmatprep.mubr.f32.mxu1 %v5425_v12 }
 0x141   : > { %2782 = vmatmul.mubr.msk.f32.gmra.mrb[44].mxu0 %vm636_vm0, %v3744_v35  ;;  %v2313_v47 = vadd.s32 1, %v2791_v22 }
 0x142   : > { %1621 = vmatprep.mubr.f32.mxu0 %v5425_v12 }
 0x143   : > { %2786 = vmatmul.mubr.msk.f32.gmra.mrb[44].mxu1 %vm636_vm0, %v3744_v35  ;;  %vm2314_vm1 = vcmp.gt.s32.totalorder %v2313_v47, 0  ;;  %v2310_v35 = vand.u32 8388607, %v2303_v19 }
 0x144   : > { %1710 = vmatprep.mubr.f32.mxu1 %v5425_v12  ;;  %v2315_v46 = vsel %vm2314_vm1, %v2313_v47, 0  ;;  %vm2606_vm1 = vcmask 1041408  }
 0x145   : > { %2783 = vmatmul.mubr.msk.f32.gmra.mrb[46].mxu0 %vm636_vm0, %v3808_v61  ;;  %v2317_v44 = vand.u32 31, %v2315_v46  ;;  %v2316_v20 = vshrl.u32 %v2315_v46, 5  ;;  %v2311_v10 = vor.u32 8388608, %v2310_v35 }
 0x147   : > { %2787 = vmatmul.mubr.msk.f32.gmra.mrb[46].mxu1 %vm636_vm0, %v3808_v61  ;;  %v2318_v0 = vsub.s32 32, %v2317_v44  ;;  %v2329_v18 = vshll.u32 %v3222_v55, %v2317_v44  ;;  %v2320_v14 = vshll.u32 %v3223_v2, %v2317_v44  ;;  %v2323_v42 = vshll.u32 %v3224_v63, %v2317_v44 }
 0x148   : > { %v2326_v50 = vshll.u32 %v3225_v40, %v2317_v44  ;;  %v2332_v21 = vshll.u32 %v3226_v37, %v2317_v44  ;;  %vm2335_vm2 = vcmp.lt.s32.totalorder %v2316_v20, 1  ;;  %vm2337_vm3 = vcmp.lt.s32.totalorder %v2316_v20, 3 }
 0x149   : > { %v2321_v49 = vshrl.u32 %v3224_v63, %v2318_v0  ;;  %v2324_v61 = vshrl.u32 %v3225_v40, %v2318_v0  ;;  %v2327_v59 = vshrl.u32 %v3222_v55, %v2318_v0  ;;  %v2330_v26 = vshrl.u32 %v3226_v37, %v2318_v0 }
 0x14a   : > { %v2333_v16 = vshrl.u32 %v3227_v32, %v2318_v0  ;;  %vm2336_vm4 = vcmp.lt.s32.totalorder %v2316_v20, 2  ;;  %vm2338_vm5 = vcmp.lt.s32.totalorder %v2316_v20, 4  ;;  %v2351_v29 = vshll.u32 %v2311_v10, 8 }
 0x14b   : > { %v2322_v53 = vor.u32 %v2321_v49, %v2320_v14  ;;  %v2325_v60 = vor.u32 %v2324_v61, %v2323_v42  ;;  %v2328_v23 = vor.u32 %v2327_v59, %v2326_v50  ;;  %v2331_v17 = vor.u32 %v2330_v26, %v2329_v18 }
 0x14c   : > { %v2334_v7 = vor.u32 %v2333_v16, %v2332_v21  ;;  %v2319_v5 = vshrl.u32 %v3223_v2, %v2318_v0  ;;  %v2233_v21 = vand.u32 2147483647, %v4222_v38  ;;  %vm2597_vm0 = vcmask 1040384  }
 0x14d   : > { %v2343_v51 = vsel %vm2335_vm2, %v2322_v53, %v2325_v60  ;;  %v2344_v33 = vsel %vm2338_vm5, %v2331_v17, 920167782  ;;  %v2347_v30 = vsel %vm2335_vm2, %v2325_v60, %v2328_v23  ;;  %v2340_v9 = vsel %vm2338_vm5, %v2328_v23, 2102212464 }
 0x14e   : > { %v2345_v1 = vsel %vm2337_vm3, %v2328_v23, %v2344_v33  ;;  %v2348_v56 = vsel %vm2338_vm5, %v2334_v7, 1326507024  ;;  %v2339_v52 = vsel %vm2335_vm2, %v2319_v5, %v2322_v53  ;;  %v2341_v25 = vsel %vm2337_vm3, %v2325_v60, %v2340_v9 }
 0x14f   : > { %v2346_v6 = vsel %vm2336_vm4, %v2343_v51, %v2345_v1  ;;  %v2349_v4 = vsel %vm2337_vm3, %v2331_v17, %v2348_v56  ;;  %v2342_v8 = vsel %vm2336_vm4, %v2339_v52, %v2341_v25  ;;  %v2788_v23 = vadd.f32 -1.0, %v2233_v21  ;;  %v5474_v21 = vld [vmem:[#allocation17_spill] sm:$0xff] }
 0x150   : > { %v2350_v11 = vsel %vm2336_vm4, %v2347_v30, %v2349_v4  ;;  %v4251_v39 = vmul.u32.u64.low %v2351_v29, %v2346_v6  ;;  %v4252_v31 = vmul.u32.u64.high %v2351_v29, %v2346_v6, %v4251_v39  ;;  %v2358_v58 = vmul.u32 %v2351_v29, %v2342_v8 }
 0x151   : > { %v4247_v24 = vmul.u32.u64.low %v2351_v29, %v2350_v11  ;;  %v4248_v36 = vmul.u32.u64.high %v2351_v29, %v2350_v11, %v4247_v24  ;;  %v3228_v7 = vmov 1966171168   ;;  %v2235_v56 = vand.u32 2147483647, %v2788_v23 }
 0x152   : > { %v2361_v34 = vadd.s32 1, %v4252_v31  ;;  %v2252_v51 = vunpack.c.l.s4 %v3228_v7  ;;  %vm2615_vm2 = vcmask 1042432  }
 0x153   : > { %vm2360_vm6 = vc.u32 %v4248_v36, %v4251_v39  ;;  %v2359_v47 = vadd.s32 %v4251_v39, %v4248_v36  ;;  %vm2236_vm14 = vcmp.le.f32.partialorder %v2235_v56, 1e-06 }
 0x154   : > { %v2362_v27 = vsel %vm2360_vm6, %v2361_v34, %v4252_v31  ;;  %v2253_v8 = vunpack.c.0.s8 %v2252_v51 }
 0x155   : > { %v2363_v13 = vadd.s32 %v2362_v27, %v2358_v58 }
 0x157   : > { %v2364_v15 = vadd.s32 536870912, %v2363_v13 }
 0x159   : > { %v2365_v28 = vshrl.u32 %v2364_v15, 30 }
 0x15b   : > { %v2366_v45 = vshll.u32 %v2365_v28, 30  ;;  %v2389_v40 = vsub.s32 4, %v2365_v28 }
 0x15d   : > { %v2367_v48 = vsub.s32 %v2363_v13, %v2366_v45  ;;  %v2390_v50 = vsel %vm2305_vm8, %v2389_v40, %v2365_v28  ;;  %v5472_v40 = vld [vmem:[#allocation16_spill] sm:$0xff] }
 0x15e   : > { %v2392_v10 = vsel %vm2304_vm9, 0, %v2390_v50 }
 0x15f   : > { %v2369_v3 = vsub.s32 0, %v2367_v48  ;;  %v2396_v59 = vadd.s32 3, %v2392_v10 }
 0x161   : > { %v2792_v57 = vmin.u32 %v2369_v3, %v2367_v48  ;;  %v2397_v53 = vand.u32 3, %v2396_v59 }
 0x163   : > { %v2371_v62 = vclz %v2792_v57  ;;  %vm2399_vm10 = vcmp.eq.s32.totalorder %v2397_v53, 0  ;;  %vm2402_vm11 = vcmp.eq.s32.totalorder %v2397_v53, 2  ;;  %vm2398_vm12 = vcmp.lt.s32.totalorder %v2397_v53, 2 }
 0x164   : > { %v4287_v57 = vsel %vm2236_vm14, 1.0, %v5425_v12 }
 0x165   : > { %v2793_v54 = vadd.s32 4294967294, %v2371_v62  ;;  %5466 = vst [vmem:[#allocation8_spill] sm:$0xff] %v4287_v57 }
 0x167   : > { %vm2794_vm7 = vcmp.lt.s32.totalorder %v2793_v54, 0 }
 0x168   : > { %v2374_v41 = vsel %vm2794_vm7, 0, %v2793_v54 }
 0x169   : > { %v2379_v22 = vsub.s32 4294967266, %v2374_v41  ;;  %v2375_v46 = vsub.s32 32, %v2374_v41  ;;  %v2376_v0 = vshll.u32 %v2367_v48, %v2374_v41  ;;  %v5465_v48 = vld [vmem:[#allocation11_spill] sm:$0xff]  ;;  %v5467_v41 = vld [vmem:[#allocation14_spill] sm:$0xff] }
 0x16a   : > { %v4284_v3 = vsub.s32 %v2253_v8, %v5465_v48 }
 0x16b   : > { %v2380_v44 = vadd.s32 127, %v2379_v22  ;;  %v2377_v55 = vshrl.u32 %v2359_v47, %v2375_v46  ;;  %v5468_v47 = vld [vmem:[#allocation12_spill] sm:$0xff] }
 0x16c   : > { %v4263_v16 = vpop.permute.xlu0 %621 }
 0x16d   : > { %v2381_v18 = vshll.u32 %v2380_v44, 23  ;;  %v2378_v35 = vor.u32 %v2377_v55, %v2376_v0 }
 0x16f   : > { %v2382_v20 = vor.u32 4788187, %v2381_v18  ;;  %v2385_v14 = vcvt.s32.f32 %v2378_v35  ;;  %v5469_v18 = vld [vmem:[#allocation15_spill] sm:$0xff] }
 0x170   : > { %v4265_v19 = vpop.permute.xlu1 %625 }
 0x171   : > { %v2383_v2 = vand.u32 2147483647, %v2382_v20  ;;  %v5470_v20 = vld [vmem:[#allocation13_spill] sm:$0xff] }
 0x173   : > { %v2386_v63 = vmul.f32 %v2385_v14, %v2383_v2 }
 0x175   : > { %v2387_v49 = vxor.u32 2147483648, %v2386_v63 }
 0x177   : > { %v2388_v42 = vsel %vm2305_vm8, %v2387_v49, %v2386_v63  ;;  %v5471_v49 = vld [vmem:[#allocation19_spill] sm:$0xff] }
 0x178   : > { %v2391_v61 = vsel %vm2304_vm9, %v4225_v43, %v2388_v42 }
 0x179   : > { %3043 = vcosq.f32 %v2391_v61 }
 0x17a   : > { %3045 = vsinq.f32 %v2391_v61 }
 0x183   : > { %v3044_v37 = vpop.eup %3043 }
 0x184   : > { %v3046_v26 = vpop.eup %3045  ;;  %v2403_v32 = vxor.u32 2147483648, %v3044_v37 }
 0x185   : > { %v2400_v60 = vxor.u32 2147483648, %v3046_v26  ;;  %v4273_v36 = vpop.permute.xlu1 %629 }
 0x186   : > { %v2404_v5 = vsel %vm2402_vm11, %v2403_v32, %v3046_v26  ;;  %v4281_v45 = vpop.permute.xlu0 %633 }
 0x187   : > { %v2401_v29 = vsel %vm2399_vm10, %v3044_v37, %v2400_v60  ;;  %v5473_v37 = vld [vmem:[#allocation21_spill] sm:$0xff] }
 0x188   : > { %v2405_v25 = vsel %vm2398_vm12, %v2401_v29, %v2404_v5 }
 0x189   : > { %v4277_v27 = vsel %vm2395_vm13, nan, %v2405_v25 }
 0x192   : > { %v4295_v55 = vpop.permute.xlu1 %1878 }
 0x194   : > { %v4316_v29 = vpop.permute.xlu0 %1882 }
 0x195   : > { %5476 = vst [vmem:[#allocation20_spill] sm:$0xff] %v4316_v29 }
 0x1bc   : > { %v715_v17 = vpop.f32.mrb[0].mxu0 }
 0x1bd   : > { %v717_v33 = vpop.f32.mrb[1].mxu0  ;;  %v716_v30 = vadd.f32 %v715_v17, %v4263_v16 }
 0x1be   : > { %v804_v38 = vpop.f32.mrb[0].mxu1  ;;  %v718_v1 = vadd.f32 %v717_v33, %v4263_v16 }
 0x1bf   : > { %v806_v9 = vpop.f32.mrb[1].mxu1  ;;  %3047 = vtanh.f32 %v716_v30  ;;  %v805_v6 = vadd.f32 %v804_v38, %v4263_v16 }
 0x1c0   : > { %3049 = vtanh.f32 %v718_v1  ;;  %v807_v4 = vadd.f32 %v806_v9, %v4263_v16  ;;  %v721_v52 = vpop.f32.mrb[2].mxu0 }
 0x1c1   : > { %v722_v11 = vadd.f32 %v721_v52, %v4265_v19  ;;  %v723_v24 = vpop.f32.mrb[3].mxu0  ;;  %3051 = vtanh.f32 %v805_v6 }
 0x1c2   : > { %3053 = vtanh.f32 %v807_v4  ;;  %v810_v39 = vpop.f32.mrb[2].mxu1  ;;  %v724_v31 = vadd.f32 %v723_v24, %v4265_v19 }
 0x1c3   : > { %3055 = vtanh.f32 %v722_v11  ;;  %v811_v58 = vadd.f32 %v810_v39, %v4265_v19  ;;  %v812_v34 = vpop.f32.mrb[3].mxu1 }
 0x1c4   : > { %3057 = vtanh.f32 %v724_v31  ;;  %v813_v43 = vadd.f32 %v812_v34, %v4265_v19  ;;  %v727_v13 = vpop.f32.mrb[4].mxu0 }
 0x1c5   : > { %3059 = vtanh.f32 %v811_v58  ;;  %v728_v15 = vadd.f32 %v727_v13, %v4273_v36  ;;  %v729_v28 = vpop.f32.mrb[5].mxu0 }
 0x1c6   : > { %3061 = vtanh.f32 %v813_v43  ;;  %v816_v62 = vpop.f32.mrb[4].mxu1  ;;  %v730_v54 = vadd.f32 %v729_v28, %v4273_v36 }
 0x1c7   : > { %3063 = vtanh.f32 %v728_v15  ;;  %v817_v44 = vadd.f32 %v816_v62, %v4273_v36  ;;  %v818_v0 = vpop.f32.mrb[5].mxu1 }
 0x1c8   : > { %3065 = vtanh.f32 %v730_v54  ;;  %v819_v14 = vadd.f32 %v818_v0, %v4273_v36  ;;  %v733_v63 = vpop.f32.mrb[6].mxu0 }
 0x1c9   : > { %v3048_v50 = vpop.eup %3047  ;;  %3067 = vtanh.f32 %v817_v44  ;;  %v734_v10 = vadd.f32 %v733_v63, %v4281_v45  ;;  %v735_v59 = vpop.f32.mrb[7].mxu0 }
 0x1ca   : > { %v3050_v60 = vpop.eup %3049  ;;  %3069 = vtanh.f32 %v819_v14  ;;  %v822_v32 = vpop.f32.mrb[6].mxu1  ;;  %v736_v23 = vadd.f32 %v735_v59, %v4281_v45  ;;  %v4312_v17 = vmul.f32 %v3048_v50, %v3048_v50  ;;  %v1893_v7 = vmul.f32 %v3048_v50, %v4295_v55 }
 0x1cb   : > { %v3052_v51 = vpop.eup %3051  ;;  %3071 = vtanh.f32 %v734_v10  ;;  %v823_v33 = vadd.f32 %v822_v32, %v4281_v45  ;;  %v824_v30 = vpop.f32.mrb[7].mxu1  ;;  %v4318_v5 = vmul.f32 %v3050_v60, %v3050_v60  ;;  %v4321_v38 = vmul.f32 %v3050_v60, %v4295_v55 }
 0x1cc   : > { %5475 = vst [vmem:[#allocation18_spill] sm:$0xff] %v4312_v17  ;;  %v4323_v1 = vpop.eup %3053  ;;  %3073 = vtanh.f32 %v736_v23  ;;  %v825_v56 = vadd.f32 %v824_v30, %v4281_v45  ;;  %v893_v9 = vpop.f32.mrb[8].mxu0  ;;  %v5327_v6 = vsub.f32 1.0, %v4312_v17  ;;  %v4327_v4 = vmul.f32 %v3052_v51, %v3052_v51 }
 0x1cd   : > { %5477 = vst [vmem:[#allocation9_spill] sm:$0xff] %v4318_v5  ;;  %v3056_v52 = vpop.eup %3055  ;;  %3075 = vtanh.f32 %v823_v33  ;;  %v894_v25 = vadd.f32 %v893_v9, %v4263_v16  ;;  %v895_v11 = vpop.f32.mrb[9].mxu0  ;;  %v1895_v24 = vmul.f32 %v3052_v51, %v4295_v55  ;;  %v5332_v8 = vsub.f32 1.0, %v4318_v5 }
 0x1ce   : > { %5478 = vst [vmem:[#allocation10_spill] sm:$0xff] %v4327_v4  ;;  %v3058_v39 = vpop.eup %3057  ;;  %3077 = vtanh.f32 %v825_v56  ;;  %v982_v31 = vpop.f32.mrb[8].mxu1  ;;  %v896_v58 = vadd.f32 %v895_v11, %v4263_v16  ;;  %v1901_v34 = vmul.f32 %v3056_v52, %v4316_v29  ;;  %v4338_v48 = vmul.f32 %v4323_v1, %v4323_v1 }
 0x1cf   : > { %v3060_v13 = vpop.eup %3059  ;;  %3079 = vtanh.f32 %v894_v25  ;;  %v983_v15 = vadd.f32 %v982_v31, %v4263_v16  ;;  %v984_v28 = vpop.f32.mrb[9].mxu1  ;;  %v4340_v62 = vmul.f32 %v3056_v52, %v3056_v52  ;;  %v4359_v25 = vmul.f32 %v3058_v39, %v3058_v39 }
 0x1d0   : > { %5479 = vst [vmem:[#allocation11_spill] sm:$0xff] %v4338_v48  ;;  %v3062_v54 = vpop.eup %3061  ;;  %3081 = vtanh.f32 %v896_v58  ;;  %v985_v44 = vadd.f32 %v984_v28, %v4263_v16  ;;  %v899_v0 = vpop.f32.mrb[10].mxu0  ;;  %v4343_v14 = vadd.f32 %v1901_v34, %v1893_v7  ;;  %v1903_v63 = vmul.f32 %v3060_v13, %v4316_v29 }
 0x1d1   : > { %5480 = vst [vmem:[#allocation22_spill] sm:$0xff] %v4340_v62  ;;  %v3064_v50 = vpop.eup %3063  ;;  %3083 = vtanh.f32 %v983_v15  ;;  %v900_v10 = vadd.f32 %v899_v0, %v4265_v19  ;;  %v901_v59 = vpop.f32.mrb[11].mxu0  ;;  %v4354_v7 = vmul.f32 %v3060_v13, %v3060_v13  ;;  %5482 = vst [vmem:[#allocation24_spill] sm:$0xff] %v4359_v25  ;;  %v4361_v11 = vmul.f32 %v3062_v54, %v3062_v54 }
 0x1d2   : > { %v4349_v23 = vpop.eup %3065  ;;  %3085 = vtanh.f32 %v985_v44  ;;  %v988_v51 = vpop.f32.mrb[10].mxu1  ;;  %v902_v16 = vadd.f32 %v901_v59, %v4265_v19  ;;  %v4352_v33 = vadd.f32 %v1903_v63, %v1895_v24  ;;  %v4367_v13 = vmul.f32 %v3064_v50, %v3064_v50 }
 0x1d3   : > { %5481 = vst [vmem:[#allocation23_spill] sm:$0xff] %v4354_v7  ;;  %v3068_v30 = vpop.eup %3067  ;;  %3087 = vtanh.f32 %v900_v10  ;;  %v989_v56 = vadd.f32 %v988_v51, %v4265_v19  ;;  %v4357_v9 = vpop.permute.xlu1 %1886  ;;  %5483 = vst [vmem:[#allocation25_spill] sm:$0xff] %v4361_v11  ;;  %v4385_v2 = vmul.f32 %v4323_v1, %v4295_v55  ;;  %v4388_v35 = vmul.f32 %v3058_v39, %v4316_v29 }
 0x1d4   : > { %v990_v52 = vpop.f32.mrb[11].mxu1  ;;  %v4363_v31 = vpop.eup %3069  ;;  %3089 = vtanh.f32 %v902_v16  ;;  %5484 = vst [vmem:[#allocation26_spill] sm:$0xff] %v4367_v13  ;;  %v4378_v16 = vmul.f32 %v3068_v30, %v3068_v30  ;;  %v4403_v26 = vmul.f32 %v3064_v50, %v4357_v9  ;;  %v4415_v61 = vmul.f32 %v3068_v30, %v4357_v9 }
 0x1d5   : > { %v991_v58 = vadd.f32 %v990_v52, %v4265_v19  ;;  %v905_v24 = vpop.f32.mrb[12].mxu0  ;;  %v4369_v15 = vpop.eup %3071  ;;  %3091 = vtanh.f32 %v989_v56  ;;  %v4424_v51 = vmul.f32 %v4363_v31, %v4357_v9  ;;  %v5494_v17 = vsub.f32 1.0, %v4327_v4 }
 0x1d6   : > { %v906_v28 = vadd.f32 %v905_v24, %v4273_v36  ;;  %v907_v44 = vpop.f32.mrb[13].mxu0  ;;  %v4374_v10 = vpop.eup %3073  ;;  %5485 = vst [vmem:[#allocation27_spill] sm:$0xff] %v4378_v16 }
 0x1d7   : > { %3093 = vtanh.f32 %v991_v58  ;;  %v994_v59 = vpop.f32.mrb[12].mxu1  ;;  %v908_v19 = vadd.f32 %v907_v44, %v4273_v36  ;;  %v4380_v52 = vpop.eup %3075 }
 0x1d8   : > { %3095 = vtanh.f32 %v906_v28  ;;  %v995_v56 = vadd.f32 %v994_v59, %v4273_v36  ;;  %v996_v24 = vpop.f32.mrb[13].mxu1  ;;  %v4390_v58 = vpop.eup %3077  ;;  %v4395_v28 = vmul.f32 %v3062_v54, %v4316_v29 }
 0x1d9   : > { %5486 = vst [vmem:[#allocation28_spill] sm:$0xff] %v4390_v58  ;;  %3097 = vtanh.f32 %v908_v19  ;;  %v997_v44 = vadd.f32 %v996_v24, %v4273_v36  ;;  %v911_v46 = vpop.f32.mrb[14].mxu0  ;;  %v4397_v59 = vpop.eup %3079  ;;  %v4407_v36 = vmul.f32 %v4349_v23, %v4357_v9 }
 0x1da   : > { %5487 = vst [vmem:[#allocation29_spill] sm:$0xff] %v4397_v59  ;;  %3099 = vtanh.f32 %v995_v56  ;;  %v4399_v22 = vpop.permute.xlu1 %1890  ;;  %v912_v1 = vadd.f32 %v911_v46, %v4281_v45  ;;  %v913_v39 = vpop.f32.mrb[15].mxu0  ;;  %v1897_v54 = vmul.f32 %v4397_v59, %v4295_v55  ;;  %v5498_v59 = vsub.f32 1.0, %v4340_v62 }
 0x1db   : > { %v4409_v19 = vpop.eup %3081  ;;  %3101 = vtanh.f32 %v997_v44  ;;  %v1000_v24 = vpop.f32.mrb[14].mxu1  ;;  %v914_v56 = vadd.f32 %v913_v39, %v4281_v45  ;;  %v4433_v34 = vmul.f32 %v4369_v15, %v4399_v22 }
 0x1dc   : > { %5488 = vst [vmem:[#allocation30_spill] sm:$0xff] %v4409_v19  ;;  %v4417_v46 = vpop.eup %3083  ;;  %v1898_v50 = vmul.f32 %v4409_v19, %v4295_v55  ;;  %3103 = vtanh.f32 %v912_v1  ;;  %v1001_v42 = vadd.f32 %v1000_v24, %v4281_v45  ;;  %v1002_v53 = vpop.f32.mrb[15].mxu1 }
 0x1dd   : > { %5489 = vst [vmem:[#allocation31_spill] sm:$0xff] %v4417_v46  ;;  %v4426_v44 = vpop.eup %3085  ;;  %v1899_v39 = vmul.f32 %v4417_v46, %v4295_v55  ;;  %3105 = vtanh.f32 %v914_v56  ;;  %v1003_v30 = vadd.f32 %v1002_v53, %v4281_v45  ;;  %v1071_v63 = vpop.f32.mrb[16].mxu0  ;;  %v4443_v56 = vmul.f32 %v4374_v10, %v4399_v22 }
 0x1de   : > { %5490 = vst [vmem:[#allocation32_spill] sm:$0xff] %v4426_v44  ;;  %v4435_v1 = vpop.eup %3087  ;;  %v1900_v24 = vmul.f32 %v4426_v44, %v4295_v55  ;;  %3107 = vtanh.f32 %v1001_v42  ;;  %v1813_v0 = vmul.f32 %v5327_v6, %v1071_v63  ;;  %v1073_v32 = vpop.f32.mrb[17].mxu0  ;;  %v4453_v42 = vmul.f32 %v4380_v52, %v4399_v22 }
 0x1df   : > { %5491 = vst [vmem:[#allocation33_spill] sm:$0xff] %v4435_v1  ;;  %v4445_v45 = vpop.eup %3089  ;;  %v1905_v53 = vmul.f32 %v4435_v1, %v4316_v29  ;;  %3109 = vtanh.f32 %v1003_v30  ;;  %v1160_v60 = vpop.f32.mrb[16].mxu1  ;;  %v1814_v43 = vmul.f32 %v5332_v8, %v1073_v32  ;;  %v4464_v30 = vmul.f32 %v4390_v58, %v4399_v22 }
 0x1e0   : > { %5492 = vst [vmem:[#allocation34_spill] sm:$0xff] %v4445_v45  ;;  %v4455_v63 = vpop.eup %3091  ;;  %v1906_v6 = vmul.f32 %v4445_v45, %v4316_v29  ;;  %v2009_v12 = vmul.f32 %v4295_v55, %v1813_v0  ;;  %v1815_v44 = vmul.f32 %v5494_v17, %v1160_v60  ;;  %v1162_v1 = vpop.f32.mrb[17].mxu1  ;;  %v5496_v45 = vsub.f32 1.0, %v4338_v48 }
 0x1e1   : > { %5493 = vst [vmem:[#allocation35_spill] sm:$0xff] %v4455_v63  ;;  %v4466_v32 = vpop.eup %3093  ;;  %v1961_v8 = vadd.f32 %v1905_v53, %v1897_v54  ;;  %v1907_v5 = vmul.f32 %v4455_v63, %v4316_v29  ;;  %v2010_v19 = vmul.f32 %v4295_v55, %v1814_v43  ;;  %v1077_v0 = vpop.f32.mrb[18].mxu0 }
 0x1e2   : > { %5495 = vst [vmem:[#allocation36_spill] sm:$0xff] %v4466_v32  ;;  %v1816_v57 = vmul.f32 %v5496_v45, %v1162_v1  ;;  %v4473_v46 = vpop.eup %3095  ;;  %v1970_v17 = vadd.f32 %v1906_v6, %v1898_v50  ;;  %v1908_v60 = vmul.f32 %v4466_v32, %v4316_v29  ;;  %v2011_v4 = vmul.f32 %v4295_v55, %v1815_v44  ;;  %v1079_v53 = vpop.f32.mrb[19].mxu0 }
 0x1e3   : > { %5497 = vst [vmem:[#allocation37_spill] sm:$0xff] %v4473_v46  ;;  %v1821_v54 = vmul.f32 %v5498_v59, %v1077_v0  ;;  %v4480_v58 = vpop.eup %3097  ;;  %v1979_v63 = vadd.f32 %v1907_v5, %v1899_v39  ;;  %v1913_v43 = vmul.f32 %v4473_v46, %v4357_v9  ;;  %v1166_v45 = vpop.f32.mrb[18].mxu1  ;;  %v5500_v6 = vsub.f32 1.0, %v4359_v25 }
 0x1e4   : > { %5499 = vst [vmem:[#allocation38_spill] sm:$0xff] %v4480_v58  ;;  %v2012_v1 = vmul.f32 %v4295_v55, %v1816_v57  ;;  %v4487_v48 = vpop.eup %3099  ;;  %v1988_v32 = vadd.f32 %v1908_v60, %v1900_v24  ;;  %v1914_v44 = vmul.f32 %v4480_v58, %v4357_v9  ;;  %v5502_v0 = vsub.f32 1.0, %v4354_v7  ;;  %v1168_v39 = vpop.f32.mrb[19].mxu1 }
 0x1e5   : > { %v1822_v50 = vmul.f32 %v5500_v6, %v1079_v53  ;;  %5501 = vst [vmem:[#allocation39_spill] sm:$0xff] %v4487_v48  ;;  %v2017_v59 = vmul.f32 %v4316_v29, %v1821_v54  ;;  %v4494_v62 = vpop.eup %3101  ;;  %v1962_v46 = vadd.f32 %v1961_v8, %v1913_v43  ;;  %v1915_v57 = vmul.f32 %v4487_v48, %v4357_v9  ;;  %v1083_v60 = vpop.f32.mrb[20].mxu0 }
 0x1e6   : > { %v1823_v5 = vmul.f32 %v5502_v0, %v1166_v45  ;;  %5503 = vst [vmem:[#allocation40_spill] sm:$0xff] %v4494_v62  ;;  %v5504_v6 = vsub.f32 1.0, %v4361_v11  ;;  %v4501_v25 = vpop.eup %3103  ;;  %v1971_v58 = vadd.f32 %v1970_v17, %v1914_v44  ;;  %v1916_v54 = vmul.f32 %v4494_v62, %v4357_v9  ;;  %v4506_v7 = vpop.f32.mrb[21].mxu0 }
 0x1e7   : > { %v2018_v53 = vmul.f32 %v4316_v29, %v1822_v50  ;;  %5505 = vst [vmem:[#allocation41_spill] sm:$0xff] %v4501_v25  ;;  %v2041_v45 = vadd.f32 %v2017_v59, %v2009_v12  ;;  %v4508_v8 = vpop.eup %3105  ;;  %v1980_v43 = vadd.f32 %v1979_v63, %v1915_v57  ;;  %v1921_v50 = vmul.f32 %v4501_v25, %v4399_v22 }
 0x1e8   : > { %v1824_v24 = vmul.f32 %v5504_v6, %v1168_v39  ;;  %v2019_v0 = vmul.f32 %v4316_v29, %v1823_v5  ;;  %5506 = vst [vmem:[#allocation42_spill] sm:$0xff] %v4508_v8  ;;  %v1172_v6 = vpop.f32.mrb[20].mxu1  ;;  %v4515_v17 = vpop.eup %3107  ;;  %v1989_v44 = vadd.f32 %v1988_v32, %v1916_v54  ;;  %v1922_v12 = vmul.f32 %v4508_v8, %v4399_v22 }
 0x1e9   : > { %v4512_v11 = vadd.f32 %v2018_v53, %v2010_v19  ;;  %5507 = vst [vmem:[#allocation43_spill] sm:$0xff] %v4515_v17  ;;  %v5508_v5 = vsub.f32 1.0, %v4367_v13  ;;  %v4521_v48 = vpop.f32.mrb[21].mxu1  ;;  %v4523_v63 = vpop.eup %3109  ;;  %v1963_v57 = vadd.f32 %v1962_v46, %v1921_v50  ;;  %v1923_v19 = vmul.f32 %v4515_v17, %v4399_v22 }
 0x1ea   : > { %v2020_v39 = vmul.f32 %v4316_v29, %v1824_v24  ;;  %v2059_v59 = vadd.f32 %v2019_v0, %v2011_v4  ;;  %5509 = vst [vmem:[#allocation44_spill] sm:$0xff] %v4523_v63  ;;  %v5510_v24 = vsub.f32 1.0, %v4378_v16  ;;  %v4531_v54 = vpop.f32.mrb[22].mxu0  ;;  %v1972_v8 = vadd.f32 %v1971_v58, %v1922_v12 }
 0x1eb   : > { %v1829_v62 = vmul.f32 %v5508_v5, %v1083_v60  ;;  %v1924_v4 = vmul.f32 %v4523_v63, %v4399_v22  ;;  %v1926_v0 = vadd.f32 %v4343_v14, %v4403_v26  ;;  %v4538_v46 = vpop.f32.mrb[23].mxu0  ;;  %v1964_v50 = vrot.slane %v1963_v57, 4 }
 0x1ec   : > { %v4527_v53 = vadd.f32 %v2020_v39, %v2012_v1  ;;  %v1831_v32 = vmul.f32 %v5510_v24, %v1172_v6  ;;  %v1981_v5 = vadd.f32 %v1980_v43, %v1923_v19  ;;  %v1934_v39 = vadd.f32 %v4388_v35, %v4321_v38  ;;  %v4543_v6 = vpop.f32.mrb[22].mxu1  ;;  %v4553_v19 = vpop.f32.mrb[24].mxu0 }
 0x1ed   : > { %v2025_v60 = vmul.f32 %v4357_v9, %v1829_v62  ;;  %v1973_v58 = vrot.slane %v1972_v8, 4  ;;  %v1990_v12 = vadd.f32 %v1989_v44, %v1924_v4  ;;  %v1927_v62 = vadd.f32 %v1926_v0, %v4433_v34  ;;  %v4548_v16 = vpop.f32.mrb[23].mxu1 }
 0x1ee   : > { %v2027_v1 = vmul.f32 %v4357_v9, %v1831_v32  ;;  %v1965_v26 = vadd.f32 %v1964_v50, %v1963_v57  ;;  %v1982_v14 = vrot.slane %v1981_v5, 4  ;;  %v1935_v43 = vadd.f32 %v1934_v39, %v4407_v36  ;;  %v4562_v57 = vpop.f32.mrb[24].mxu1 }
 0x1ef   : > { %v4545_v24 = vadd.f32 %v2041_v45, %v2025_v60  ;;  %v1974_v32 = vadd.f32 %v1973_v58, %v1972_v8  ;;  %v1991_v35 = vrot.slane %v1990_v12, 4  ;;  %v1928_v38 = vrot.slane %v1927_v62, 4  ;;  %v4557_v45 = vpop.f32.mrb[25].mxu0 }
 0x1f0   : > { %v4550_v13 = vadd.f32 %v2059_v59, %v2027_v1  ;;  %v1944_v44 = vadd.f32 %v4352_v33, %v4415_v61  ;;  %v1966_v4 = vrot.slane %v1965_v26, 2  ;;  %v1983_v34 = vadd.f32 %v1982_v14, %v1981_v5  ;;  %v4565_v1 = vpop.f32.mrb[25].mxu1  ;;  %v4568_v5 = vpop.f32.mrb[26].mxu0 }
 0x1f1   : > { %v1936_v60 = vadd.f32 %v1935_v43, %v4443_v56  ;;  %v1952_v59 = vadd.f32 %v4395_v28, %v4385_v2  ;;  %v1975_v36 = vrot.slane %v1974_v32, 2  ;;  %v1992_v0 = vadd.f32 %v1991_v35, %v1990_v12  ;;  %v4570_v28 = vpop.f32.mrb[27].mxu0 }
 0x1f2   : > { %v1929_v50 = vadd.f32 %v1928_v38, %v1927_v62  ;;  %v1945_v8 = vadd.f32 %v1944_v44, %v4453_v42  ;;  %v1967_v39 = vadd.f32 %v1966_v4, %v1965_v26  ;;  %v1984_v61 = vrot.slane %v1983_v34, 2  ;;  %5511 = vst [vmem:[#allocation45_spill] sm:$0xff] %v4570_v28  ;;  %v4573_v35 = vpop.f32.mrb[26].mxu1  ;;  %v1999_v28 = vpop.permute.xlu0 %1998 }
 0x1f3   : > { %v1937_v33 = vrot.slane %v1936_v60, 4  ;;  %v1953_v58 = vadd.f32 %v1952_v59, %v4424_v51  ;;  %v1976_v56 = vadd.f32 %v1975_v36, %v1974_v32  ;;  %v1993_v14 = vrot.slane %v1992_v0, 2  ;;  %v4575_v51 = vpop.f32.mrb[27].mxu1 }
 0x1f4   : > { %v1930_v43 = vrot.slane %v1929_v50, 2  ;;  %v1946_v2 = vrot.slane %v1945_v8, 4  ;;  %v1985_v63 = vadd.f32 %v1984_v61, %v1983_v34  ;;  %v1968_v42 = vrot.slane %v1967_v39, 1  ;;  %5512 = vst [vmem:[#allocation46_spill] sm:$0xff] %v4575_v51  ;;  %v4577_v25 = vpop.f32.mrb[28].mxu0 }
 0x1f5   : > { %v1938_v12 = vadd.f32 %v1937_v33, %v1936_v60  ;;  %v1954_v62 = vadd.f32 %v1953_v58, %v4464_v30  ;;  %v1994_v26 = vadd.f32 %v1993_v14, %v1992_v0  ;;  %v1977_v4 = vrot.slane %v1976_v56, 1  ;;  %5513 = vst [vmem:[#allocation47_spill] sm:$0xff] %v4577_v25  ;;  %v4579_v33 = vpop.f32.mrb[29].mxu0 }
 0x1f6   : > { %v1931_v38 = vadd.f32 %v1930_v43, %v1929_v50  ;;  %v1947_v44 = vadd.f32 %v1946_v2, %v1945_v8  ;;  %v1969_v36 = vadd.f32 %v1968_v42, %v1967_v39  ;;  %v1986_v17 = vrot.slane %v1985_v63, 1  ;;  %v4583_v14 = vpop.f32.mrb[28].mxu1 }
 0x1f7   : > { %v1939_v59 = vrot.slane %v1938_v12, 2  ;;  %v1955_v32 = vrot.slane %v1954_v62, 4  ;;  %v1978_v61 = vadd.f32 %v1977_v4, %v1976_v56  ;;  %v1995_v30 = vrot.slane %v1994_v26, 1  ;;  %v4587_v25 = vpop.f32.mrb[29].mxu1 }
 0x1f8   : > { %v1932_v34 = vrot.slane %v1931_v38, 1  ;;  %v1948_v60 = vrot.slane %v1947_v44, 2  ;;  %v1987_v50 = vadd.f32 %v1986_v17, %v1985_v63  ;;  %v4581_v8 = vadd.f32 %v1999_v28, %v1969_v36  ;;  %v4595_v63 = vpop.f32.mrb[30].mxu0 }
 0x1f9   : > { %v1940_v58 = vadd.f32 %v1939_v59, %v1938_v12  ;;  %v1956_v0 = vadd.f32 %v1955_v32, %v1954_v62  ;;  %v1996_v39 = vadd.f32 %v1995_v30, %v1994_v26  ;;  %v4585_v42 = vadd.f32 %v1999_v28, %v1978_v61 }
 0x1fa   : > { %v1933_v43 = vadd.f32 %v1932_v34, %v1931_v38  ;;  %v1949_v2 = vadd.f32 %v1948_v60, %v1947_v44  ;;  %v4589_v56 = vadd.f32 %v1999_v28, %v1987_v50  ;;  %v5516_v12 = vrot.slane %v4277_v27, %v5471_v49  ;;  %v4603_v44 = vpop.f32.mrb[31].mxu0  ;;  %v4613_v30 = vpop.f32.mrb[30].mxu1 }
 0x1fb   : > { %5514 = vst [vmem:[#allocation48_spill] sm:$0xff] %v4585_v42  ;;  %v1941_v51 = vrot.slane %v1940_v58, 1  ;;  %v1957_v29 = vrot.slane %v1956_v0, 2  ;;  %v4599_v38 = vadd.f32 %v1999_v28, %v1996_v39  ;;  %v2249_v26 = vcombine.low %v4581_v8, %v4585_v42 }
 0x1fc   : > { %5515 = vst [vmem:[#allocation49_spill] sm:$0xff] %v4589_v56  ;;  %v2452_v17 = vsub.f32 %v4581_v8, %v5516_v12  ;;  %v1950_v62 = vrot.slane %v1949_v2, 1  ;;  %v4597_v4 = vadd.f32 %v1999_v28, %v1933_v43  ;;  %v5518_v36 = vrot.slane %v4277_v27, %v5472_v40 }
 0x1fd   : > { %5517 = vst [vmem:[#allocation50_spill] sm:$0xff] %v4599_v38  ;;  %v1942_v59 = vadd.f32 %v1941_v51, %v1940_v58  ;;  %v1958_v32 = vadd.f32 %v1957_v29, %v1956_v0  ;;  %v5519_v60 = vrot.slane %v4277_v27, %v5473_v37  ;;  %v2250_v43 = vcombine.low %v4589_v56, %v4599_v38  ;;  %v4622_v58 = vpop.f32.mrb[31].mxu1 }
 0x1fe   : > { %v2453_v34 = vsub.f32 %v4585_v42, %v5518_v36  ;;  %v1951_v50 = vadd.f32 %v1950_v62, %v1949_v2  ;;  %v2271_v39 = vrot.slane %v2249_v26, %v4284_v3  ;;  %v5520_v29 = vrot.slane %v4277_v27, %v5467_v41 }
 0x1ff   : > { %v2454_v61 = vsub.f32 %v4589_v56, %v5519_v60  ;;  %v1959_v0 = vrot.slane %v1958_v32, 1  ;;  %v4624_v12 = vadd.f32 %v1999_v28, %v1942_v59  ;;  %v5521_v36 = vrot.slane %v4277_v27, %v5474_v21  ;;  %v4630_v60 = vpop.f32.mrb[32].mxu0 }
 0x200   : > { %v2448_v51 = vsub.f32 %v4597_v4, %v5520_v29  ;;  %v2466_v62 = vcombine.low %v2452_v17, %v2453_v34  ;;  %v4632_v40 = vadd.f32 %v1999_v28, %v1951_v50  ;;  %v2278_v26 = vrot.slane %v2250_v43, %v4284_v3  ;;  %v4643_v37 = vpop.f32.mrb[33].mxu0 }
 0x201   : > { %v2455_v2 = vsub.f32 %v4599_v38, %v5521_v36  ;;  %v4637_v29 = vmul.f32 %v4349_v23, %v4349_v23  ;;  %v4641_v59 = vmul.f32 %v4363_v31, %v4363_v31  ;;  %v1960_v21 = vadd.f32 %v1959_v0, %v1958_v32  ;;  %v4651_v36 = vpop.f32.mrb[32].mxu1 }
 0x202   : > { %v2247_v17 = vcombine.low %v4597_v4, %v4624_v12  ;;  %v5522_v34 = vrot.slane %v4277_v27, %v5468_v47  ;;  %v2280_v23 = vcombine.low %v2271_v39, %v2278_v26  ;;  %v5523_v49 = vrot.slane %v4277_v27, %v5469_v18  ;;  %v4659_v0 = vpop.f32.mrb[33].mxu1 }
 0x203   : > { %v2467_v43 = vcombine.low %v2454_v61, %v2455_v2  ;;  %v2488_v38 = vrot.slane %v2466_v62, %v4284_v3  ;;  %v5366_v32 = vsub.f32 1.0, %v4637_v29  ;;  %v4661_v42 = vadd.f32 %v1999_v28, %v1960_v21  ;;  %v4665_v2 = vpop.f32.mrb[34].mxu0 }
 0x204   : > { %v2449_v50 = vsub.f32 %v4624_v12, %v5522_v34  ;;  %v2450_v31 = vsub.f32 %v4632_v40, %v5523_v49  ;;  %v2257_v47 = vrot.slane %v2247_v17, %v4284_v3  ;;  %v2294_v39 = vrot.slane %v2280_v23, %v4284_v3  ;;  %v4676_v21 = vpop.f32.mrb[35].mxu0 }
 0x205   : > { %v2495_v61 = vrot.slane %v2467_v43, %v4284_v3  ;;  %v1830_v49 = vmul.f32 %v5366_v32, %v4506_v7  ;;  %v5368_v62 = vsub.f32 1.0, %v4641_v59  ;;  %v4674_v26 = vmul.f32 %v4369_v15, %v4369_v15  ;;  %v4685_v7 = vpop.f32.mrb[34].mxu1 }
 0x206   : > { %v2464_v34 = vcombine.low %v2448_v51, %v2449_v50  ;;  %v2248_v28 = vcombine.low %v4632_v40, %v4661_v42  ;;  %v5524_v51 = vrot.slane %v4277_v27, %v5470_v20  ;;  %v4694_v18 = vmul.f32 %v4380_v52, %v4380_v52  ;;  %v4696_v27 = vpop.f32.mrb[35].mxu1  ;;  %v5528_v20 = vld [vmem:[#allocation28_spill] sm:$0xff] }
 0x207   : > { %v2497_v43 = vcombine.low %v2488_v38, %v2495_v61  ;;  %v2026_v23 = vmul.f32 %v4357_v9, %v1830_v49  ;;  %v1832_v15 = vmul.f32 %v5368_v62, %v4521_v48  ;;  %v5371_v32 = vsub.f32 1.0, %v4674_v26  ;;  %v4706_v49 = vpop.f32.mrb[36].mxu0 }
 0x208   : > { %v2451_v17 = vsub.f32 %v4661_v42, %v5524_v51  ;;  %v2474_v50 = vrot.slane %v2464_v34, %v4284_v3  ;;  %5525 = vst [vmem:[#allocation51_spill] sm:$0xff] %v4694_v18  ;;  %v2264_v51 = vrot.slane %v2248_v28, %v4284_v3  ;;  %v4704_v61 = vmul.f32 %v4374_v10, %v4374_v10 }
 0x209   : > { %v4700_v38 = vrot.slane %v2497_v43, %v4284_v3  ;;  %v2051_v48 = vadd.f32 %v4512_v11, %v2026_v23  ;;  %v2028_v62 = vmul.f32 %v4357_v9, %v1832_v15  ;;  %v1837_v52 = vmul.f32 %v5371_v32, %v4531_v54  ;;  %v4722_v11 = vpop.f32.mrb[36].mxu1  ;;  %v5530_v32 = vld [vmem:[#allocation29_spill] sm:$0xff] }
 0x20a   : > { %v2465_v34 = vcombine.low %v2450_v31, %v2451_v17  ;;  %5527 = vst [vmem:[#allocation53_spill] sm:$0xff] %v4704_v61  ;;  %v5373_v28 = vsub.f32 1.0, %v4694_v18  ;;  %v4714_v31 = vpop.f32.mrb[37].mxu0  ;;  %v2279_v17 = vcombine.low %v2257_v47, %v2264_v51  ;;  %v5375_v10 = vsub.f32 1.0, %v4704_v61  ;;  %v4733_v51 = vpop.f32.mrb[37].mxu1 }
 0x20b   : > { %5526 = vst [vmem:[#allocation52_spill] sm:$0xff] %v4700_v38  ;;  %v4720_v41 = vmul.f32 %v5528_v20, %v5528_v20  ;;  %v2069_v23 = vadd.f32 %v4527_v53, %v2028_v62  ;;  %v2033_v15 = vmul.f32 %v4399_v22, %v1837_v52  ;;  %v4731_v47 = vmul.f32 %v5530_v32, %v5530_v32  ;;  %v4740_v62 = vpop.f32.mrb[38].mxu0 }
 0x20c   : > { %v2481_v43 = vrot.slane %v2465_v34, %v4284_v3  ;;  %v1839_v54 = vmul.f32 %v5373_v28, %v4543_v6  ;;  %v2287_v34 = vrot.slane %v2279_v17, %v4284_v3  ;;  %v1838_v56 = vmul.f32 %v5375_v10, %v4538_v46  ;;  %v5532_v28 = vld [vmem:[#allocation31_spill] sm:$0xff] }
 0x20d   : > { %5529 = vst [vmem:[#allocation28_spill] sm:$0xff] %v4720_v41  ;;  %5531 = vst [vmem:[#allocation29_spill] sm:$0xff] %v4731_v47  ;;  %v5376_v53 = vsub.f32 1.0, %v4720_v41  ;;  %v2043_v6 = vadd.f32 %v4545_v24, %v2033_v15  ;;  %v5378_v32 = vsub.f32 1.0, %v4731_v47  ;;  %v4747_v18 = vmul.f32 %v5532_v28, %v5532_v28  ;;  %v4758_v15 = vpop.f32.mrb[38].mxu1 }
 0x20e   : > { %v2496_v20 = vcombine.low %v2474_v50, %v2481_v43  ;;  %v2035_v52 = vmul.f32 %v4399_v22, %v1839_v54  ;;  %v4749_v50 = vpop.f32.mrb[39].mxu0  ;;  %v2295_v17 = vcombine.low %v2287_v34, %v2294_v39  ;;  %v2034_v43 = vmul.f32 %v4399_v22, %v1838_v56  ;;  %v4765_v34 = vpop.f32.mrb[39].mxu1 }
 0x20f   : > { %5533 = vst [vmem:[#allocation31_spill] sm:$0xff] %v4747_v18  ;;  %v1840_v24 = vmul.f32 %v5376_v53, %v4548_v16  ;;  %v2044_v54 = vrot.slane %v2043_v6, 4  ;;  %v1817_v28 = vmul.f32 %v5378_v32, %v4553_v19  ;;  %v5382_v39 = vsub.f32 1.0, %v4747_v18  ;;  %5535 = vst [vmem:[#allocation55_spill] sm:$0xff] %v4765_v34  ;;  %v4774_v41 = vpop.f32.mrb[40].mxu0 }
 0x210   : > { %v4752_v46 = vrot.slane %v2496_v20, %v4284_v3  ;;  %v2061_v10 = vadd.f32 %v4550_v13, %v2035_v52  ;;  %v4768_v3 = vld [vmem:[%s3373_s7 + $0x1] ss:$2 sm:$0xff]  ;;  %v2052_v20 = vadd.f32 %v2051_v48, %v2034_v43  ;;  %5536 = vst [vmem:[#allocation56_spill] sm:$0xff] %v4774_v41  ;;  %v4782_v34 = vpop.f32.mrb[41].mxu0  ;;  %v5539_v48 = vld [vmem:[#allocation30_spill] sm:$0xff]  ;;  %s3150_s7 = scalar_lea.vmem %s3149_s6, 1024 }
 0x211   : > { %v2036_v53 = vmul.f32 %v4399_v22, %v1840_v24  ;;  %v5537_v13 = vld [vmem:[#allocation8_spill] sm:$0xff]  ;;  %v2045_v19 = vadd.f32 %v2044_v54, %v2043_v6  ;;  %v1819_v47 = vmul.f32 %v5382_v39, %v4562_v57  ;;  %v2013_v16 = vmul.f32 %v4295_v55, %v1817_v28  ;;  %v4789_v24 = vpop.f32.mrb[40].mxu1  ;;  %v5544_v28 = vld [vmem:[#allocation33_spill] sm:$0xff]  ;;  %p3152_p3 = scmp.lt.s32.totalorder %s3150_s7, %s3144_s4 }
 0x212   : > { %5534 = vst [vmem:[#allocation54_spill] sm:$0xff] %v4752_v46  ;;  %v4777_v52 = vmul.f32 %v5537_v13, %v2295_v17  ;;  %v2062_v32 = vrot.slane %v2061_v10, 4  ;;  %5538 = vst [vmem:[#allocation8_spill] sm:$0xff] %v4782_v34  ;;  %v2053_v56 = vrot.slane %v2052_v20, 4  ;;  %v4787_v43 = vmul.f32 %v5539_v48, %v5539_v48  ;;  %v5541_v54 = vld [vmem:[#allocation32_spill] sm:$0xff]  ;;  %v4796_v57 = vpop.f32.mrb[41].mxu1 }
 0x213   : > { %v2070_v61 = vadd.f32 %v2069_v23, %v2036_v53  ;;  %5540 = vst [vmem:[#allocation30_spill] sm:$0xff] %v4789_v24  ;;  %v2046_v17 = vrot.slane %v2045_v19, 2  ;;  %v2015_v6 = vmul.f32 %v4295_v55, %v1819_v47  ;;  %v4794_v38 = vmul.f32 %v5541_v54, %v5541_v54  ;;  %5543 = vst [vmem:[#allocation57_spill] sm:$0xff] %v4796_v57  ;;  %v4803_v46 = vpop.f32.mrb[42].mxu0  ;;  %v4816_v24 = vpop.f32.mrb[42].mxu1  ;;  %p3153_p4 = por %p3152_p3, %p3151_p2 }
 0x214   : > { %v2063_v13 = vadd.f32 %v2062_v32, %v2061_v10  ;;  %v2054_v39 = vadd.f32 %v2053_v56, %v2052_v20  ;;  %v5385_v53 = vsub.f32 1.0, %v4787_v43  ;;  %v4801_v48 = vmul.f32 %v5544_v28, %v5544_v28  ;;  %5545 = vst [vmem:[#allocation33_spill] sm:$0xff] %v4803_v46  ;;  %v5546_v32 = vld [vmem:[#allocation35_spill] sm:$0xff]  ;;  %v4810_v18 = vpop.f32.mrb[43].mxu0  ;;  %5548 = vst [vmem:[#allocation58_spill] sm:$0xff] %v4816_v24  ;;  %v4822_v41 = vpop.f32.mrb[43].mxu1 }
 0x215   : > { %5542 = vst [vmem:[#allocation32_spill] sm:$0xff] %v4794_v38  ;;  %v2071_v23 = vrot.slane %v2070_v61, 4  ;;  %v2047_v34 = vadd.f32 %v2046_v17, %v2045_v19  ;;  %v5386_v47 = vsub.f32 1.0, %v4794_v38  ;;  %v4808_v54 = vmul.f32 %v5546_v32, %v5546_v32  ;;  %5547 = vst [vmem:[#allocation35_spill] sm:$0xff] %v4810_v18  ;;  %v5553_v38 = vld [vmem:[#allocation34_spill] sm:$0xff]  ;;  %p3154_p7 = pnand %p3153_p4, %p3147_p12 }
 0x216   : > { %v2064_v10 = vrot.slane %v2063_v13, 2  ;;  %v2055_v56 = vrot.slane %v2054_v39, 2  ;;  %v1818_v57 = vmul.f32 %v5385_v53, %v4557_v45  ;;  %v5388_v28 = vsub.f32 1.0, %v4801_v48  ;;  %5549 = vst [vmem:[#allocation59_spill] sm:$0xff] %v4822_v41  ;;  %v4828_v53 = vpop.f32.mrb[44].mxu0 }
 0x217   : > { %v2072_v20 = vadd.f32 %v2071_v23, %v2070_v61  ;;  %v2048_v19 = vrot.slane %v2047_v34, 1  ;;  %v1820_v46 = vmul.f32 %v5386_v47, %v4565_v1  ;;  %v5389_v32 = vsub.f32 1.0, %v4808_v54  ;;  %v4836_v47 = vpop.f32.mrb[45].mxu0 }
 0x218   : > { %v2065_v17 = vadd.f32 %v2064_v10, %v2063_v13  ;;  %v2056_v18 = vadd.f32 %v2055_v56, %v2054_v39  ;;  %v2014_v23 = vmul.f32 %v4295_v55, %v1818_v57  ;;  %v1825_v45 = vmul.f32 %v5388_v28, %v4568_v5  ;;  %5551 = vst [vmem:[#allocation61_spill] sm:$0xff] %v4836_v47  ;;  %v5552_v57 = vld [vmem:[#allocation20_spill] sm:$0xff]  ;;  %v4843_v28 = vpop.f32.mrb[44].mxu1 }
 0x219   : > { %v2073_v61 = vrot.slane %v2072_v20, 2  ;;  %v4830_v24 = vadd.f32 %v2048_v19, %v2047_v34  ;;  %v2016_v10 = vmul.f32 %v4295_v55, %v1820_v46  ;;  %v1827_v1 = vmul.f32 %v5389_v32, %v4573_v35  ;;  %5554 = vst [vmem:[#allocation20_spill] sm:$0xff] %v4843_v28  ;;  %v5556_v19 = vld [vmem:[#allocation36_spill] sm:$0xff]  ;;  %v4861_v28 = vpop.f32.mrb[46].mxu0 }
 0x21a   : > { %v2066_v13 = vrot.slane %v2065_v17, 1  ;;  %v2057_v39 = vrot.slane %v2056_v18, 1  ;;  %v2021_v41 = vmul.f32 %v5552_v57, %v1825_v45  ;;  %v4841_v5 = vmul.f32 %v5553_v38, %v5553_v38  ;;  %5558 = vst [vmem:[#allocation62_spill] sm:$0xff] %v4861_v28 }
 0x21b   : > { %5550 = vst [vmem:[#allocation60_spill] sm:$0xff] %v4830_v24  ;;  %v2074_v56 = vadd.f32 %v2073_v61, %v2072_v20  ;;  %v4847_v34 = vmul.f32 %v4830_v24, %v4597_v4  ;;  %v2023_v35 = vmul.f32 %v5552_v57, %v1827_v1  ;;  %v4854_v32 = vmul.f32 %v5556_v19, %v5556_v19  ;;  %v4856_v20 = vpop.f32.mrb[45].mxu1  ;;  %v5560_v1 = vld [vmem:[#allocation37_spill] sm:$0xff]  ;;  %v4872_v24 = vpop.f32.mrb[47].mxu0 }
 0x21c   : > { %v4849_v46 = vadd.f32 %v2066_v13, %v2065_v17  ;;  %v4858_v61 = vadd.f32 %v2057_v39, %v2056_v18  ;;  %v2077_v45 = vadd.f32 %v2021_v41, %v2013_v16  ;;  %v5392_v47 = vsub.f32 1.0, %v4841_v5  ;;  %5561 = vst [vmem:[#allocation37_spill] sm:$0xff] %v4872_v24  ;;  %v5564_v16 = vld [vmem:[#allocation45_spill] sm:$0xff]  ;;  %v5565_v39 = vld [vmem:[#allocation39_spill] sm:$0xff] }
 0x21d   : > { %v2075_v38 = vrot.slane %v2074_v56, 1  ;;  %v2095_v17 = vadd.f32 %v2023_v35, %v2015_v6  ;;  %v5393_v13 = vsub.f32 1.0, %v4854_v32  ;;  %v4870_v19 = vmul.f32 %v5560_v1, %v5560_v1  ;;  %v4887_v35 = vpop.f32.mrb[46].mxu1  ;;  %v5567_v1 = vld [vmem:[#allocation46_spill] sm:$0xff] }
 0x21e   : > { %5555 = vst [vmem:[#allocation34_spill] sm:$0xff] %v4849_v46  ;;  %5557 = vst [vmem:[#allocation36_spill] sm:$0xff] %v4858_v61  ;;  %v4865_v4 = vmul.f32 %v4849_v46, %v4632_v40  ;;  %v4876_v41 = vmul.f32 %v4858_v61, %v4624_v12  ;;  %v1826_v40 = vmul.f32 %v5392_v47, %v5564_v16  ;;  %v5568_v12 = vld [vmem:[#allocation38_spill] sm:$0xff]  ;;  %v4901_v16 = vpop.f32.mrb[47].mxu1 }
 0x21f   : > { %v4878_v18 = vadd.f32 %v2075_v38, %v2074_v56  ;;  %v4885_v6 = vmul.f32 %v5565_v39, %v5565_v39  ;;  %5566 = vst [vmem:[#allocation45_spill] sm:$0xff] %v4887_v35  ;;  %v1828_v24 = vmul.f32 %v5393_v13, %v5567_v1  ;;  %v4895_v56 = vmul.f32 %v5568_v12, %v5568_v12  ;;  %v5569_v38 = vld [vmem:[#allocation40_spill] sm:$0xff]  ;;  %v5572_v13 = vld [vmem:[#allocation41_spill] sm:$0xff]  ;;  %v5574_v35 = vld [vmem:[#allocation47_spill] sm:$0xff] }
 0x220   : > { %5559 = vst [vmem:[#allocation63_spill] sm:$0xff] %v4865_v4  ;;  %5562 = vst [vmem:[#allocation64_spill] sm:$0xff] %v4876_v41  ;;  %v4899_v61 = vmul.f32 %v5569_v38, %v5569_v38  ;;  %v2022_v47 = vmul.f32 %v5552_v57, %v1826_v40  ;;  %v4911_v28 = vmul.f32 %v5572_v13, %v5572_v13  ;;  %v5575_v38 = vsub.f32 1.0, %v4870_v19 }
 0x221   : > { %5563 = vst [vmem:[#allocation65_spill] sm:$0xff] %v4878_v18  ;;  %5570 = vst [vmem:[#allocation39_spill] sm:$0xff] %v4901_v16  ;;  %v4905_v39 = vmul.f32 %v4878_v18, %v4661_v42  ;;  %v5399_v1 = vsub.f32 1.0, %v4885_v6  ;;  %v2024_v12 = vmul.f32 %v5552_v57, %v1828_v24  ;;  %v5396_v16 = vsub.f32 1.0, %v4895_v56 }
 0x222   : > { %5573 = vst [vmem:[#allocation38_spill] sm:$0xff] %v4911_v28  ;;  %v1833_v46 = vmul.f32 %v5575_v38, %v5574_v35  ;;  %v5397_v41 = vsub.f32 1.0, %v4899_v61  ;;  %v2086_v42 = vadd.f32 %v2022_v47, %v2014_v23  ;;  %v5398_v18 = vsub.f32 1.0, %v4911_v28  ;;  %v5577_v38 = vld [vmem:[#allocation42_spill] sm:$0xff] }
 0x223   : > { %5571 = vst [vmem:[#allocation46_spill] sm:$0xff] %v4905_v39  ;;  %v1835_v40 = vmul.f32 %v5399_v1, %v4583_v14  ;;  %v5576_v39 = vld [vmem:[#allocation43_spill] sm:$0xff]  ;;  %v2104_v24 = vadd.f32 %v2024_v12, %v2016_v10  ;;  %v1834_v35 = vmul.f32 %v5396_v16, %v4579_v33  ;;  %v4941_v10 = vmul.f32 %v5577_v38, %v5577_v38  ;;  %v5578_v16 = vld [vmem:[#allocation44_spill] sm:$0xff] }
 0x224   : > { %v4925_v13 = vmul.f32 %v5576_v39, %v5576_v39  ;;  %v2029_v4 = vmul.f32 %v4357_v9, %v1833_v46  ;;  %v1836_v47 = vmul.f32 %v5397_v41, %v4587_v25  ;;  %v1841_v14 = vmul.f32 %v5398_v18, %v4595_v63 }
 0x225   : > { %v2031_v23 = vmul.f32 %v4357_v9, %v1835_v40  ;;  %v2030_v12 = vmul.f32 %v4357_v9, %v1834_v35  ;;  %v4947_v25 = vmul.f32 %v5578_v16, %v5578_v16  ;;  %v5402_v18 = vsub.f32 1.0, %v4941_v10 }
 0x226   : > { %v5403_v39 = vsub.f32 1.0, %v4925_v13  ;;  %v2078_v46 = vadd.f32 %v2077_v45, %v2029_v4  ;;  %v2032_v33 = vmul.f32 %v4357_v9, %v1836_v47  ;;  %v2037_v41 = vmul.f32 %v4399_v22, %v1841_v14  ;;  %v5579_v4 = vld [vmem:[#allocation18_spill] sm:$0xff] }
 0x227   : > { %v2096_v40 = vadd.f32 %v2095_v17, %v2031_v23  ;;  %v2087_v38 = vadd.f32 %v2086_v42, %v2030_v12  ;;  %v5401_v45 = vsub.f32 1.0, %v4947_v25  ;;  %v5580_v35 = vsub.f32 1.0, %v5579_v4  ;;  %v5581_v23 = vld [vmem:[#allocation10_spill] sm:$0xff]  ;;  %v5583_v12 = vld [vmem:[#allocation9_spill] sm:$0xff] }
 0x228   : > { %v1843_v63 = vmul.f32 %v5403_v39, %v4613_v30  ;;  %v2105_v1 = vadd.f32 %v2104_v24, %v2032_v33  ;;  %v2079_v28 = vadd.f32 %v2078_v46, %v2037_v41  ;;  %v1842_v17 = vmul.f32 %v5402_v18, %v4603_v44  ;;  %v5585_v46 = vld [vmem:[#allocation11_spill] sm:$0xff] }
 0x229   : > { %v1845_v47 = vmul.f32 %v5580_v35, %v4630_v60  ;;  %v5582_v30 = vsub.f32 1.0, %v5581_v23  ;;  %v1844_v42 = vmul.f32 %v5401_v45, %v4622_v58  ;;  %v5584_v60 = vsub.f32 1.0, %v5583_v12 }
 0x22a   : > { %v2039_v16 = vmul.f32 %v4399_v22, %v1843_v63  ;;  %v5586_v33 = vsub.f32 1.0, %v5585_v46  ;;  %v2080_v4 = vrot.slane %v2079_v28, 4  ;;  %v2038_v35 = vmul.f32 %v4399_v22, %v1842_v17 }
 0x22b   : > { %v1847_v14 = vmul.f32 %v5582_v30, %v4651_v36  ;;  %v2113_v24 = vmul.f32 %v4295_v55, %v1845_v47  ;;  %v1846_v41 = vmul.f32 %v5584_v60, %v4643_v37  ;;  %v2040_v23 = vmul.f32 %v4399_v22, %v1844_v42  ;;  %v5587_v30 = vld [vmem:[#allocation22_spill] sm:$0xff] }
 0x22c   : > { %v1848_v63 = vmul.f32 %v5586_v33, %v4659_v0  ;;  %v2097_v44 = vadd.f32 %v2096_v40, %v2039_v16  ;;  %v5588_v12 = vsub.f32 1.0, %v5587_v30  ;;  %v2081_v60 = vadd.f32 %v2080_v4, %v2079_v28  ;;  %v5589_v0 = vld [vmem:[#allocation23_spill] sm:$0xff]  ;;  %v5594_v33 = vld [vmem:[#allocation24_spill] sm:$0xff]  ;;  %v5596_v28 = vld [vmem:[#allocation25_spill] sm:$0xff] }
 0x22d   : > { %v2115_v36 = vmul.f32 %v4295_v55, %v1847_v14  ;;  %v2114_v58 = vmul.f32 %v4295_v55, %v1846_v41  ;;  %v2088_v46 = vadd.f32 %v2087_v38, %v2038_v35  ;;  %v5590_v40 = vsub.f32 1.0, %v5589_v0  ;;  %v5610_v14 = vld [vmem:[#allocation53_spill] sm:$0xff] }
 0x22e   : > { %v2116_v47 = vmul.f32 %v4295_v55, %v1848_v63  ;;  %v1853_v37 = vmul.f32 %v5588_v12, %v4665_v2  ;;  %v2098_v45 = vrot.slane %v2097_v44, 4  ;;  %v5591_v17 = vand.u32 2147483647, %v4768_v3 }
 0x22f   : > { %v1855_v16 = vmul.f32 %v5590_v40, %v4685_v7  ;;  %v2106_v42 = vadd.f32 %v2105_v1, %v2040_v23  ;;  %v5595_v63 = vsub.f32 1.0, %v5594_v33  ;;  %v5597_v38 = vsub.f32 1.0, %v5596_v28 }
 0x230   : > { %vm4988_vm15 = vcmp.le.f32.partialorder %v5591_v17, 1e-06  ;;  %v2121_v41 = vmul.f32 %v5552_v57, %v1853_v37  ;;  %v2082_v35 = vrot.slane %v2081_v60, 2  ;;  %v2099_v30 = vadd.f32 %v2098_v45, %v2097_v44 }
 0x231   : > { %v1854_v2 = vmul.f32 %v5595_v63, %v4676_v21  ;;  %v1856_v4 = vmul.f32 %v5597_v38, %v4696_v27  ;;  %v2089_v7 = vrot.slane %v2088_v46, 4  ;;  %v2123_v3 = vmul.f32 %v5552_v57, %v1855_v16  ;;  %v5598_v27 = vld [vmem:[#allocation26_spill] sm:$0xff] }
 0x232   : > { %v2107_v12 = vrot.slane %v2106_v42, 4  ;;  %v2145_v0 = vadd.f32 %v2121_v41, %v2113_v24  ;;  %v2083_v23 = vadd.f32 %v2082_v35, %v2081_v60  ;;  %v2100_v37 = vrot.slane %v2099_v30, 2  ;;  %v5600_v24 = vld [vmem:[#allocation27_spill] sm:$0xff] }
 0x233   : > { %v2122_v40 = vmul.f32 %v5552_v57, %v1854_v2  ;;  %v2124_v1 = vmul.f32 %v5552_v57, %v1856_v4  ;;  %v2090_v17 = vadd.f32 %v2089_v7, %v2088_v46  ;;  %v2163_v33 = vadd.f32 %v2123_v3, %v2115_v36 }
 0x234   : > { %v2108_v21 = vadd.f32 %v2107_v12, %v2106_v42  ;;  %v5599_v28 = vsub.f32 1.0, %v5598_v27  ;;  %v2084_v44 = vrot.slane %v2083_v23, 1  ;;  %v2101_v38 = vadd.f32 %v2100_v37, %v2099_v30 }
 0x235   : > { %v2154_v63 = vadd.f32 %v2122_v40, %v2114_v58  ;;  %v2172_v18 = vadd.f32 %v2124_v1, %v2116_v47  ;;  %v2091_v16 = vrot.slane %v2090_v17, 2  ;;  %v5601_v41 = vsub.f32 1.0, %v5600_v24 }
 0x236   : > { %v1861_v45 = vmul.f32 %v5599_v28, %v4706_v49  ;;  %v2109_v39 = vrot.slane %v2108_v21, 2  ;;  %v5602_v36 = vsub.f32 1.0, %v4637_v29  ;;  %v5603_v58 = vsub.f32 1.0, %v4641_v59 }
 0x237   : > { %v1863_v2 = vmul.f32 %v5601_v41, %v4722_v11  ;;  %v5015_v42 = vadd.f32 %v2084_v44, %v2083_v23  ;;  %v2102_v49 = vrot.slane %v2101_v38, 1  ;;  %v2092_v4 = vadd.f32 %v2091_v16, %v2090_v17  ;;  %v5606_v17 = vld [vmem:[#allocation49_spill] sm:$0xff]  ;;  %v5613_v41 = vld [vmem:[#allocation15_spill] sm:$0xff] }
 0x238   : > { %v2129_v60 = vmul.f32 %v4357_v9, %v1861_v45  ;;  %v1862_v46 = vmul.f32 %v5602_v36, %v4714_v31  ;;  %v1864_v47 = vmul.f32 %v5603_v58, %v4733_v51  ;;  %v2110_v30 = vadd.f32 %v2109_v39, %v2108_v21  ;;  %v5617_v58 = vld [vmem:[#allocation50_spill] sm:$0xff] }
 0x239   : > { %v2131_v35 = vmul.f32 %v4357_v9, %v1863_v2  ;;  %v5022_v29 = vmul.f32 %v5015_v42, %v4581_v8  ;;  %v5024_v31 = vadd.f32 %v2102_v49, %v2101_v38  ;;  %v2093_v59 = vrot.slane %v2092_v4, 1  ;;  %v5612_v38 = vld [vmem:[#allocation48_spill] sm:$0xff]  ;;  %v5614_v2 = vld [vmem:[#allocation55_spill] sm:$0xff] }
 0x23a   : > { %v2146_v7 = vadd.f32 %v2145_v0, %v2129_v60  ;;  %v2130_v11 = vmul.f32 %v4357_v9, %v1862_v46  ;;  %v2132_v3 = vmul.f32 %v4357_v9, %v1864_v47  ;;  %v2111_v12 = vrot.slane %v2110_v30, 1  ;;  %v5615_v60 = vld [vmem:[#allocation28_spill] sm:$0xff] }
 0x23b   : > { %v2164_v51 = vadd.f32 %v2163_v33, %v2131_v35  ;;  %v5604_v23 = vsub.f32 1.0, %v4674_v26  ;;  %v5605_v0 = vmov 0.0   ;;  %v5036_v8 = vmul.f32 %v5024_v31, %v5606_v17  ;;  %v5607_v33 = vld [vmem:[#allocation51_spill] sm:$0xff] }
 0x23c   : > { %v2155_v40 = vadd.f32 %v2154_v63, %v2130_v11  ;;  %v2173_v1 = vadd.f32 %v2172_v18, %v2132_v3  ;;  %v5032_v37 = vsel %vm4988_vm15, 1.0, %v5605_v0  ;;  %v5038_v21 = vadd.f32 %v2093_v59, %v2092_v4  ;;  %v5618_v4 = vld [vmem:[#allocation12_spill] sm:$0xff]  ;;  %v5620_v59 = vld [vmem:[#allocation29_spill] sm:$0xff]  ;;  %v5623_v0 = vld [vmem:[#allocation31_spill] sm:$0xff] }
 0x23d   : > { %v1869_v39 = vmul.f32 %v5604_v23, %v4740_v62  ;;  %v5608_v27 = vsub.f32 1.0, %v5607_v33  ;;  %v5043_v18 = vadd.f32 %v2111_v12, %v2110_v30  ;;  %v5609_v62 = vld [vmem:[#allocation14_spill] sm:$0xff]  ;;  %v5611_v45 = vsub.f32 1.0, %v5610_v14  ;;  %v5619_v3 = vld [vmem:[#allocation56_spill] sm:$0xff] }
 0x23e   : > { %v2519_v28 = vrot.slane %v4777_v52, %v5609_v62  ;;  %v5053_v16 = vmul.f32 %v5038_v21, %v5612_v38  ;;  %v5616_v36 = vsub.f32 1.0, %v5615_v60  ;;  %v2523_v35 = vrot.slane %v4777_v52, %v5618_v4  ;;  %v5625_v14 = vld [vmem:[#allocation8_spill] sm:$0xff] }
 0x23f   : > { %v1871_v63 = vmul.f32 %v5608_v27, %v4758_v15  ;;  %v2137_v26 = vmul.f32 %v4399_v22, %v1869_v39  ;;  %v1870_v44 = vmul.f32 %v5611_v45, %v4749_v50  ;;  %v2527_v15 = vrot.slane %v4777_v52, %v5613_v41  ;;  %v5622_v39 = vld [vmem:[#allocation30_spill] sm:$0xff]  ;;  %v5627_v45 = vld [vmem:[#allocation57_spill] sm:$0xff] }
 0x240   : > { %v1872_v46 = vmul.f32 %v5616_v36, %v5614_v2  ;;  %v5063_v47 = vmul.f32 %v5043_v18, %v5617_v58  ;;  %v5621_v12 = vsub.f32 1.0, %v5620_v59  ;;  %v5624_v17 = vsub.f32 1.0, %v5623_v0  ;;  %v5630_v59 = vld [vmem:[#allocation33_spill] sm:$0xff]  ;;  %v5632_v0 = vld [vmem:[#allocation58_spill] sm:$0xff] }
 0x241   : > { %v2139_v24 = vmul.f32 %v4399_v22, %v1871_v63  ;;  %v2147_v49 = vadd.f32 %v2146_v7, %v2137_v26  ;;  %v2138_v50 = vmul.f32 %v4399_v22, %v1870_v44  ;;  %v5626_v7 = vsub.f32 1.0, %v4787_v43  ;;  %v5628_v44 = vld [vmem:[#allocation32_spill] sm:$0xff] }
 0x242   : > { %v2140_v11 = vmul.f32 %v4399_v22, %v1872_v46  ;;  %v1849_v23 = vmul.f32 %v5621_v12, %v5619_v3  ;;  %v1851_v33 = vmul.f32 %v5624_v17, %v5622_v39  ;;  %v5629_v38 = vsub.f32 1.0, %v5628_v44 }
 0x243   : > { %v2165_v30 = vadd.f32 %v2164_v51, %v2139_v24  ;;  %v2148_v27 = vrot.slane %v2147_v49, 4  ;;  %v2156_v63 = vadd.f32 %v2155_v40, %v2138_v50  ;;  %v1850_v26 = vmul.f32 %v5626_v7, %v5625_v14  ;;  %v5636_v14 = vld [vmem:[#allocation59_spill] sm:$0xff] }
 0x244   : > { %v1852_v51 = vmul.f32 %v5629_v38, %v5627_v45  ;;  %v2174_v2 = vadd.f32 %v2173_v1, %v2140_v11  ;;  %v2117_v60 = vmul.f32 %v4295_v55, %v1849_v23  ;;  %v2119_v36 = vmul.f32 %v4295_v55, %v1851_v33 }
 0x245   : > { %v2166_v24 = vrot.slane %v2165_v30, 4  ;;  %v2149_v46 = vadd.f32 %v2148_v27, %v2147_v49  ;;  %v2157_v58 = vrot.slane %v2156_v63, 4  ;;  %v2118_v3 = vmul.f32 %v4295_v55, %v1850_v26  ;;  %v5634_v49 = vld [vmem:[#allocation35_spill] sm:$0xff] }
 0x246   : > { %v2120_v40 = vmul.f32 %v4295_v55, %v1852_v51  ;;  %v2175_v43 = vrot.slane %v2174_v2, 4  ;;  %v5631_v12 = vsub.f32 1.0, %v4801_v48  ;;  %v5633_v1 = vsub.f32 1.0, %v4808_v54 }
 0x247   : > { %v2167_v50 = vadd.f32 %v2166_v24, %v2165_v30  ;;  %v2150_v23 = vrot.slane %v2149_v46, 2  ;;  %v2158_v17 = vadd.f32 %v2157_v58, %v2156_v63  ;;  %v5635_v33 = vsub.f32 1.0, %v4841_v5 }
 0x248   : > { %v1857_v39 = vmul.f32 %v5631_v12, %v5630_v59  ;;  %v1859_v11 = vmul.f32 %v5633_v1, %v5632_v0  ;;  %v5637_v55 = vsub.f32 1.0, %v4854_v32  ;;  %v2176_v26 = vadd.f32 %v2175_v43, %v2174_v2 }
 0x249   : > { %v1858_v27 = vmul.f32 %v5635_v33, %v5634_v49  ;;  %v2168_v7 = vrot.slane %v2167_v50, 2  ;;  %v2151_v44 = vadd.f32 %v2150_v23, %v2149_v46  ;;  %v2159_v54 = vrot.slane %v2158_v17, 2  ;;  %v5639_v46 = vld [vmem:[#allocation20_spill] sm:$0xff] }
 0x24a   : > { %v1860_v30 = vmul.f32 %v5637_v55, %v5636_v14  ;;  %v2125_v48 = vmul.f32 %v5552_v57, %v1857_v39  ;;  %v2127_v45 = vmul.f32 %v5552_v57, %v1859_v11  ;;  %v2177_v24 = vrot.slane %v2176_v26, 2 }
 0x24b   : > { %v2126_v38 = vmul.f32 %v5552_v57, %v1858_v27  ;;  %v2169_v51 = vadd.f32 %v2168_v7, %v2167_v50  ;;  %v2152_v59 = vrot.slane %v2151_v44, 1  ;;  %v2160_v12 = vadd.f32 %v2159_v54, %v2158_v17  ;;  %v5641_v50 = vld [vmem:[#allocation61_spill] sm:$0xff] }
 0x24c   : > { %v2128_v63 = vmul.f32 %v5552_v57, %v1860_v30  ;;  %v2181_v5 = vadd.f32 %v2125_v48, %v2117_v60  ;;  %v2199_v58 = vadd.f32 %v2127_v45, %v2119_v36  ;;  %v2178_v2 = vadd.f32 %v2177_v24, %v2176_v26  ;;  %v5644_v30 = vld [vmem:[#allocation63_spill] sm:$0xff]  ;;  %v5646_v45 = vld [vmem:[#allocation64_spill] sm:$0xff] }
 0x24d   : > { %v2190_v32 = vadd.f32 %v2126_v38, %v2118_v3  ;;  %v2170_v1 = vrot.slane %v2169_v51, 1  ;;  %v5638_v43 = vsub.f32 1.0, %v4870_v19  ;;  %v5640_v11 = vsub.f32 1.0, %v4885_v6 }
 0x24e   : > { %v2208_v0 = vadd.f32 %v2128_v63, %v2120_v40  ;;  %v2153_v49 = vadd.f32 %v2152_v59, %v2151_v44  ;;  %v2161_v57 = vrot.slane %v2160_v12, 1  ;;  %v5642_v60 = vsub.f32 1.0, %v4895_v56  ;;  %v5647_v63 = vld [vmem:[#allocation34_spill] sm:$0xff] }
 0x24f   : > { %v1865_v39 = vmul.f32 %v5638_v43, %v4828_v53  ;;  %v1867_v23 = vmul.f32 %v5640_v11, %v5639_v46  ;;  %v5643_v3 = vsub.f32 1.0, %v4899_v61  ;;  %v2171_v17 = vadd.f32 %v2170_v1, %v2169_v51  ;;  %v5645_v61 = vld [vmem:[#allocation60_spill] sm:$0xff]  ;;  %v5648_v51 = vld [vmem:[#allocation46_spill] sm:$0xff]  ;;  %v5654_v43 = vld [vmem:[#allocation45_spill] sm:$0xff] }
 0x250   : > { %v1866_v36 = vmul.f32 %v5642_v60, %v5641_v50  ;;  %v2179_v33 = vrot.slane %v2178_v2, 1  ;;  %v2225_v19 = vadd.f32 %v4847_v34, %v2153_v49  ;;  %v2162_v6 = vadd.f32 %v2161_v57, %v2160_v12  ;;  %v5656_v11 = vld [vmem:[#allocation54_spill] sm:$0xff]  ;;  %v5659_v50 = vld [vmem:[#allocation65_spill] sm:$0xff] }
 0x251   : > { %v1868_v40 = vmul.f32 %v5643_v3, %v4856_v20  ;;  %v2133_v27 = vmul.f32 %v4357_v9, %v1865_v39  ;;  %v2135_v53 = vmul.f32 %v4357_v9, %v1867_v23  ;;  %v2227_v56 = vadd.f32 %v5644_v30, %v2171_v17  ;;  %v5657_v23 = vld [vmem:[#allocation52_spill] sm:$0xff] }
 0x252   : > { %v2134_v14 = vmul.f32 %v4357_v9, %v1866_v36  ;;  %v2180_v7 = vadd.f32 %v2179_v33, %v2178_v2  ;;  %v2598_v20 = vsel %vm2597_vm0, %v2225_v19, %v5645_v61  ;;  %v2226_v44 = vadd.f32 %v5646_v45, %v2162_v6  ;;  %v5653_v2 = vld [vmem:[#allocation13_spill] sm:$0xff] }
 0x253   : > { %v2136_v55 = vmul.f32 %v4357_v9, %v1868_v40  ;;  %v2182_v26 = vadd.f32 %v2181_v5, %v2133_v27  ;;  %v2200_v48 = vadd.f32 %v2199_v58, %v2135_v53  ;;  %v2607_v34 = vsel %vm2606_vm1, %v2598_v20, %v2519_v28  ;;  %v5649_v5 = vld [vmem:[#allocation62_spill] sm:$0xff]  ;;  %v5660_v40 = vld [vmem:[#allocation37_spill] sm:$0xff]  ;;  %v5662_v27 = vld [vmem:[#allocation39_spill] sm:$0xff] }
 0x254   : > { %v2191_v54 = vadd.f32 %v2190_v32, %v2134_v14  ;;  %v2600_v9 = vsel %vm2597_vm0, %v2227_v56, %v5647_v63  ;;  %v2228_v24 = vadd.f32 %v5648_v51, %v2180_v7  ;;  %v5650_v58 = vld [vmem:[#allocation38_spill] sm:$0xff]  ;;  %v2531_v28 = vrot.slane %v4777_v52, %v5653_v2 }
 0x255   : > { %v2209_v38 = vadd.f32 %v2208_v0, %v2136_v55  ;;  %v5651_v59 = vsub.f32 1.0, %v5650_v58  ;;  %v2609_v32 = vsel %vm2606_vm1, %v2600_v9, %v2527_v15  ;;  %v5652_v0 = vld [vmem:[#allocation36_spill] sm:$0xff]  ;;  %v5655_v39 = vsub.f32 1.0, %v4925_v13 }
 0x256   : > { %v2599_v1 = vsel %vm2597_vm0, %v2226_v44, %v5652_v0  ;;  %v5658_v49 = vcombine.low %v5656_v11, %v5657_v23  ;;  %v2601_v60 = vsel %vm2597_vm0, %v2228_v24, %v5659_v50  ;;  %v5661_v17 = vsub.f32 1.0, %v4941_v10  ;;  %v5664_v11 = vld [vmem:[#allocation19_spill] sm:$0xff] }
 0x257   : > { %v1873_v12 = vmul.f32 %v5651_v59, %v5649_v5  ;;  %v1875_v46 = vmul.f32 %v5655_v39, %v5654_v43  ;;  %v2608_v15 = vsel %vm2606_vm1, %v2599_v1, %v2523_v35  ;;  %v2610_v13 = vsel %vm2606_vm1, %v2601_v60, %v2531_v28  ;;  %v5665_v60 = vld [vmem:[#allocation21_spill] sm:$0xff] }
 0x258   : > { %v5147_v57 = vmul.f32 %v5032_v37, %v5658_v49  ;;  %v1874_v37 = vmul.f32 %v5661_v17, %v5660_v40  ;;  %v5663_v53 = vsub.f32 1.0, %v4947_v25  ;;  %v2535_v23 = vrot.slane %v4777_v52, %v5664_v11 }
 0x259   : > { %v2141_v36 = vmul.f32 %v4399_v22, %v1873_v12  ;;  %v2143_v3 = vmul.f32 %v4399_v22, %v1875_v46 }
 0x25a   : > { %v1876_v19 = vmul.f32 %v5663_v53, %v5662_v27  ;;  %v2142_v6 = vmul.f32 %v4399_v22, %v1874_v37  ;;  %v2560_v30 = vrot.slane %v5147_v57, %v5609_v62  ;;  %v2564_v10 = vrot.slane %v5147_v57, %v5618_v4  ;;  %v5666_v37 = vld [vmem:[#allocation16_spill] sm:$0xff] }
 0x25b   : > { %v2183_v33 = vadd.f32 %v2182_v26, %v2141_v36  ;;  %v2201_v35 = vadd.f32 %v2200_v48, %v2143_v3  ;;  %v2568_v25 = vrot.slane %v5147_v57, %v5613_v41  ;;  %v2572_v61 = vrot.slane %v5147_v57, %v5653_v2 }
 0x25c   : > { %v2144_v55 = vmul.f32 %v4399_v22, %v1876_v19  ;;  %v2192_v7 = vadd.f32 %v2191_v54, %v2142_v6  ;;  %v2616_v62 = vsel %vm2615_vm2, %v2607_v34, %v2560_v30  ;;  %v2617_v45 = vsel %vm2615_vm2, %v2608_v15, %v2564_v10 }
 0x25d   : > { %v2184_v14 = vrot.slane %v2183_v33, 4  ;;  %v2202_v56 = vrot.slane %v2201_v35, 4  ;;  %v2618_v63 = vsel %vm2615_vm2, %v2609_v32, %v2568_v25  ;;  %v2619_v4 = vsel %vm2615_vm2, %v2610_v13, %v2572_v61 }
 0x25e   : > { %v2210_v48 = vadd.f32 %v2209_v38, %v2144_v55  ;;  %v2193_v20 = vrot.slane %v2192_v7, 4  ;;  %v2632_v51 = vcombine.low %v2616_v62, %v2617_v45  ;;  %v2633_v38 = vcombine.low %v2618_v63, %v2619_v4 }
 0x25f   : > { %v2185_v26 = vadd.f32 %v2184_v14, %v2183_v33  ;;  %v2203_v22 = vadd.f32 %v2202_v56, %v2201_v35  ;;  %v2543_v36 = vrot.slane %v4777_v52, %v5665_v60  ;;  %v2576_v3 = vrot.slane %v5147_v57, %v5664_v11  ;;  %v5667_v35 = vld [vmem:[#allocation17_spill] sm:$0xff] }
 0x260   : > { %v2211_v54 = vrot.slane %v2210_v48, 4  ;;  %v2194_v41 = vadd.f32 %v2193_v20, %v2192_v7  ;;  %2640 = vst [vmem:[%s5181_s25] sm:$0xff] %v2632_v51  ;;  %2641 = vst [vmem:[%s5181_s25 + $0x8] sm:$0xff] %v2633_v38  ;;  %v2584_v17 = vrot.slane %v5147_v57, %v5665_v60  ;;  %v2539_v33 = vrot.slane %v4777_v52, %v5666_v37 }
 0x261   : > { %v2186_v44 = vrot.slane %v2185_v26, 2  ;;  %v2204_v9 = vrot.slane %v2203_v22, 2 }
 0x262   : > { %v2212_v5 = vadd.f32 %v2211_v54, %v2210_v48  ;;  %v2195_v59 = vrot.slane %v2194_v41, 2 }
 0x263   : > { %v2187_v24 = vadd.f32 %v2186_v44, %v2185_v26  ;;  %v2205_v58 = vadd.f32 %v2204_v9, %v2203_v22 }
 0x264   : > { %v2213_v12 = vrot.slane %v2212_v5, 2  ;;  %v2196_v32 = vadd.f32 %v2195_v59, %v2194_v41 }
 0x265   : > { %v2188_v34 = vrot.slane %v2187_v24, 1  ;;  %v2206_v0 = vrot.slane %v2205_v58, 1 }
 0x266   : > { %v2214_v2 = vadd.f32 %v2213_v12, %v2212_v5  ;;  %v2197_v43 = vrot.slane %v2196_v32, 1 }
 0x267   : > { %v2189_v1 = vadd.f32 %v2188_v34, %v2187_v24  ;;  %v2207_v28 = vadd.f32 %v2206_v0, %v2205_v58 }
 0x268   : > { %v2215_v46 = vrot.slane %v2214_v2, 1  ;;  %v2198_v15 = vadd.f32 %v2197_v43, %v2196_v32 }
 0x269   : > { %v2229_v39 = vadd.f32 %v5022_v29, %v2189_v1  ;;  %v2231_v49 = vadd.f32 %v5036_v8, %v2207_v28 }
 0x26a   : > { %v2216_v13 = vadd.f32 %v2215_v46, %v2214_v2  ;;  %v2230_v8 = vadd.f32 %v5053_v16, %v2198_v15  ;;  %v2580_v16 = vrot.slane %v5147_v57, %v5666_v37 }
 0x26b   : > { %v2602_v50 = vsel %vm2597_vm0, %v2229_v39, %v5015_v42  ;;  %v2604_v40 = vsel %vm2597_vm0, %v2231_v49, %v5024_v31  ;;  %v2547_v31 = vrot.slane %v4777_v52, %v5667_v35 }
 0x26c   : > { %v2611_v29 = vsel %vm2606_vm1, %v2602_v50, %v2535_v23  ;;  %v2613_v42 = vsel %vm2606_vm1, %v2604_v40, %v2543_v36  ;;  %v2232_v27 = vadd.f32 %v5063_v47, %v2216_v13  ;;  %v2603_v19 = vsel %vm2597_vm0, %v2230_v8, %v5038_v21 }
 0x26d   : > { %v2620_v53 = vsel %vm2615_vm2, %v2611_v29, %v2576_v3  ;;  %v2622_v6 = vsel %vm2615_vm2, %v2613_v42, %v2584_v17  ;;  %v2612_v14 = vsel %vm2606_vm1, %v2603_v19, %v2539_v33  ;;  %v2588_v21 = vrot.slane %v5147_v57, %v5667_v35 }
 0x26e   : > { %v2605_v47 = vsel %vm2597_vm0, %v2232_v27, %v5043_v18  ;;  %v2621_v55 = vsel %vm2615_vm2, %v2612_v14, %v2580_v16 }
 0x26f   : > { %v2614_v52 = vsel %vm2606_vm1, %v2605_v47, %v2547_v31  ;;  %v2634_v56 = vcombine.low %v2620_v53, %v2621_v55 }
 0x270   : > { %v2623_v30 = vsel %vm2615_vm2, %v2614_v52, %v2588_v21 }
 0x271   : > { %v2635_v7 = vcombine.low %v2622_v6, %v2623_v30  ;;  %2642 = vst [vmem:[%s5181_s25 + $0x10] sm:$0xff] %v2634_v56 }
 0x273   : > { %2643 = vst [vmem:[%s5181_s25 + $0x18] sm:$0xff] %v2635_v7 }
 0x274   : > { %3157 = shalt.err (!%p3154_p7)
}
 0x275   : > { %s3158_s8 = scalar_lea.hbm %s5226_s30, 512  ;;  %s3162_s11 = scalar_lea.hbm %s5275_s3, 1024 }
 0x276   : > { %p3159_p8 = scmp.ne.s32.totalorder %s5226_s30, %s3158_s8  ;;  %p3163_p1 = scmp.lt.u32.totalorder %s5226_s30, %s5275_s3 }
 0x277   : > { %p3164_p0 = scmp.lt.u32.totalorder %s3162_s11, %s3158_s8  ;;  %p3166_p6 = scmp.lt.u32.totalorder %s3158_s8, %s5226_s30 }
 0x278   : > { %p3160_p11 = pnand %p3159_p8, %p5668_p9 }
 0x279   : > { %p3165_p5 = por %p3164_p0, %p3163_p1 }
 0x27a   : > { %p3161_p13 = pneg %p3160_p11 }
 0x27b   : > { %p3167_p10 = por %p3166_p6, %p3165_p5 }
 0x27d   : > { %p3168_p12 = pnand %p3167_p10, %p3161_p13 }
 0x27f   : > { %3171 = shalt.err (!%p3168_p12)
}
 0x280   : > { %2905 = dma.vmem_to_hbm [thread:$0]  (%p5668_p9), %s5228_s27, 512, %s5226_s30, %s2645_s16  }
 0x281 PF: > { %p2917_p2 = scmp.ge.s32.totalorder %s3210_s15, 2  ;;  %s2671_s20 = sand.u32 1, %s3198_s12  }
 0x282   : > { %p5669_p3 = scmp.ne.s32.totalorder %s5405_s23, 0  ;;  %s2672_s24 = scalar_lea.sflag [#allocation4], %s2671_s20 }
 0x284   : > { %p2912_p4 = pnand %p2917_p2, %p5669_p3 }
 0x286   : > { %3193 = dma.done.wait (!%p2912_p4), %s2672_s24, 512  }
 0x287   : > { %3195 = vsyncadd (!%p2912_p4), %s2672_s24, 4294966784  ;;  %p14_p7 = scmp.ge.s32.totalorder %s3275_s18, 4   ;;  %s5670_s12 = smov %s3202_s13 }
 0x288   : > { %s5671_s13 = smov %s3206_s14  ;;  %s5672_s14 = smov %s3286_s21 }
 0x289   : > { %s5673_s15 = smov %s3275_s18  ;;  %16 = sbr.rel (!%p14_p7) target bundleno = 4 (0x4), region = 73 }
 0x290   :  { %2677 = vsyncpa [#allocation3], 1 }
 0x291   :  { %2679 = vsyncpa [#allocation3 + $0x1], 1 }
 0x292   :  { %2680 = vsyncpa [#allocation4], 1 }
 0x293   :  { %2682 = vsyncpa [#allocation4 + $0x1], 1 }

</bundles_post_ra>
